<compile_context>
chip_gen: v5e
topology: v5e:2x2
jax: 0.10.0
libtpu: 0.0.40
codegen_flags: <defaults>
</compile_context>

<pallas_src>
import functools
import math

import jax
import jax.numpy as jnp
from jax.experimental import pallas as pl
from jax.experimental.pallas import tpu as pltpu

_SQRT_2_OVER_PI = math.sqrt(2.0 / math.pi)


def _norm(y, alpha, beta, eps):
    """alpha * (y - mean) / (std + eps) + beta, unbiased (n-1) std (torch default)."""
    d = y.shape[-1]
    mu = jnp.mean(y, axis=-1, keepdims=True)
    yc = y - mu
    var = jnp.sum(yc * yc, axis=-1, keepdims=True) * (1.0 / (d - 1))
    # EUP reciprocal keeps the divide's refinement off the VALU slot.
    inv = pl.reciprocal(jnp.sqrt(var) + eps, approx=True)
    return alpha * (yc * inv) + beta


def llayer_kernel(x_ref,
                  a1_ref, g1_ref,      # norm_1: alpha, bias          (1, D) f32
                  wl_ref, bl_ref,      # linear: W^T (D, D), bias     (1, D)
                  a2_ref, g2_ref,      # norm_2: alpha, bias          (1, D) f32
                  w1_ref, b1_ref,      # ffn.linear_1: W^T (D, F), b  (1, F)
                  w2_ref, b2_ref,      # ffn.linear_2: W^T (F, D), b  (1, D)
                  o_ref,
                  *, eps):
    mm_dtype = wl_ref.dtype                     # bf16 (MXU-native) or f32 (parity)
    x = x_ref[...].astype(jnp.float32)          # (TM, D)

    # ---- sublayer 1: x = x + Linear(norm_1(x)) ------------------------------
    x2 = _norm(x, a1_ref[...], g1_ref[...], eps)
    x = x + jnp.dot(x2.astype(mm_dtype), wl_ref[...],
                    preferred_element_type=jnp.float32) + bl_ref[...]

    # ---- sublayer 2: x = x + FFN(norm_2(x)) ---------------------------------
    x2 = _norm(x, a2_ref[...], g2_ref[...], eps)
    h = jnp.dot(x2.astype(mm_dtype), w1_ref[...],
                preferred_element_type=jnp.float32) + b1_ref[...]
    # tanh-approximated GELU, exactly as the PyTorch GELU module.  Kept in f32
    # so the identical kernel is safe on v5e (no bf16 VALU/EUP).
    h = 0.5 * h * (1.0 + jnp.tanh(_SQRT_2_OVER_PI * (h + 0.044715 * (h * h * h))))
    x = x + jnp.dot(h.astype(mm_dtype), w2_ref[...],
                    preferred_element_type=jnp.float32) + b2_ref[...]

    o_ref[...] = x.astype(o_ref.dtype)
    # TODO(synk): for very large d_ff, tile the hidden dim F over an extra
    #             "arbitrary" grid axis so w1/w2 need not be fully VMEM-resident.


def _round_up(x, m):
    return ((x + m - 1) // m) * m


def _vmem_limit_bytes():
    """Generation-aware scoped-VMEM budget (v7x: 64 MiB/TC, v5e/v6e: 128 MiB)."""
    try:
        cap = pltpu.get_tpu_info().vmem_capacity_bytes
    except Exception:
        cap = 64 * 1024 * 1024
    return int(min(cap * 3 // 4, 100 * 1024 * 1024))


def _pick_row_tile(n_rows, vmem_limit, row_tile):
    if row_tile is None:
        # Bigger tiles on 128 MiB parts (v5e/v6e), smaller on v7x (64 MiB).
        row_tile = 1024 if vmem_limit >= 80 * 1024 * 1024 else 512
    row_tile = max(8, _round_up(row_tile, 8))
    if n_rows <= row_tile:
        # Split the single grid axis in two (sublane-aligned) whenever possible
        # so v7x's two TensorCores both get work.
        half = _round_up(pl.cdiv(n_rows, 2), 8)
        return half if half < n_rows else n_rows
    return row_tile


def llayer_forward(x, params, *, eps=1e-6, compute_dtype=jnp.bfloat16, row_tile=None):
    """x: (B, S, D) -> (B, S, D).  params: see init_params()."""
    (alpha1, beta1, w_lin, b_lin,
     alpha2, beta2, w_ff1, b_ff1, w_ff2, b_ff2) = params

    B, S, D = x.shape
    F = w_ff1.shape[0]                           # d_ff
    N = B * S
    x2d = x.reshape(N, D)

    vmem_limit = _vmem_limit_bytes()
    TM = _pick_row_tile(N, vmem_limit, row_tile)
    grid = (pl.cdiv(N, TM),)

    # nn.Linear stores W as (out, in); lay it out (in, out) ONCE here so the
    # kernel never transposes, and hand the MXU its native dtype.  In
    # production, keep weights stored pre-transposed (and pre-cast) in HBM.
    f32 = jnp.float32
    wl_t = w_lin.T.astype(compute_dtype)         # (D, D)
    w1_t = w_ff1.T.astype(compute_dtype)         # (D, F)
    w2_t = w_ff2.T.astype(compute_dtype)         # (F, D)
    args = (x2d,
            alpha1.astype(f32), beta1.astype(f32),
            wl_t, b_lin.astype(f32),
            alpha2.astype(f32), beta2.astype(f32),
            w1_t, b_ff1.astype(f32),
            w2_t, b_ff2.astype(f32))

    row_spec = pl.BlockSpec((TM, D), lambda i: (i, 0))
    kernel = functools.partial(llayer_kernel, eps=eps)

    def build(single_buffer_weights):
        if single_buffer_weights:
            # Constant index_map -> block never changes; double-buffering it is
            # pure VMEM waste, so request a single buffer.
            def resident(shape):
                return pl.BlockSpec(shape, lambda i: (0, 0),
                                    pipeline_mode=pl.Buffered(1))
        else:
            def resident(shape):
                return pl.BlockSpec(shape, lambda i: (0, 0))

        return pl.pallas_call(
            kernel,
            out_shape=jax.ShapeDtypeStruct((N, D), x.dtype),
            grid_spec=pltpu.PrefetchScalarGridSpec(
                num_scalar_prefetch=0,
                grid=grid,
                in_specs=[row_spec,
                          resident((1, D)), resident((1, D)),    # norm_1
                          resident((D, D)), resident((1, D)),    # linear
                          resident((1, D)), resident((1, D)),    # norm_2
                          resident((D, F)), resident((1, F)),    # ffn.linear_1
                          resident((F, D)), resident((1, D))],   # ffn.linear_2
                out_specs=row_spec,
            ),
            compiler_params=pltpu.CompilerParams(
                dimension_semantics=("parallel",),
                vmem_limit_bytes=vmem_limit,
            ),
        )

    try:
        out = jax.block_until_ready(build(True)(*args))
    except Exception:
        # Fallback if this Pallas build rejects Buffered(1) on resident blocks.
        out = build(False)(*args)

    return out.reshape(B, S, D)


def reference_llayer(x, params, *, eps=1e-6):
    """Pure-JAX reference mirroring the PyTorch LLayer (eval mode), all f32."""
    (alpha1, beta1, w_lin, b_lin,
     alpha2, beta2, w_ff1, b_ff1, w_ff2, b_ff2) = params

    def norm(y, a, b):
        d = y.shape[-1]
        mu = y.mean(axis=-1, keepdims=True)
        var = ((y - mu) ** 2).sum(axis=-1, keepdims=True) / (d - 1)  # unbiased std
        return a * (y - mu) / (jnp.sqrt(var) + eps) + b

    def gelu(h):
        return 0.5 * h * (1.0 + jnp.tanh(_SQRT_2_OVER_PI * (h + 0.044715 * h ** 3)))

    x2 = norm(x, alpha1, beta1)
    x = x + x2 @ w_lin.T + b_lin
    x2 = norm(x, alpha2, beta2)
    h = gelu(x2 @ w_ff1.T + b_ff1)
    x = x + h @ w_ff2.T + b_ff2
    return x


def init_params(key, d_model, d_ff):
    """Deterministic nn.Linear-style init; Norm params perturbed from (1, 0)
    so the correctness check actually exercises them."""
    keys = jax.random.split(key, 10)

    def lin(kw, kb, fan_in, fan_out):
        bound = 1.0 / math.sqrt(fan_in)
        w = jax.random.uniform(kw, (fan_out, fan_in), jnp.float32, -bound, bound)
        b = jax.random.uniform(kb, (1, fan_out), jnp.float32, -bound, bound)
        return w, b

    w_lin, b_lin = lin(keys[0], keys[1], d_model, d_model)
    w_ff1, b_ff1 = lin(keys[2], keys[3], d_model, d_ff)
    w_ff2, b_ff2 = lin(keys[4], keys[5], d_ff, d_model)
    alpha1 = 1.0 + 0.1 * jax.random.normal(keys[6], (1, d_model), jnp.float32)
    beta1 = 0.1 * jax.random.normal(keys[7], (1, d_model), jnp.float32)
    alpha2 = 1.0 + 0.1 * jax.random.normal(keys[8], (1, d_model), jnp.float32)
    beta2 = 0.1 * jax.random.normal(keys[9], (1, d_model), jnp.float32)
    return (alpha1, beta1, w_lin, b_lin,
            alpha2, beta2, w_ff1, b_ff1, w_ff2, b_ff2)


if __name__ == "__main__":
    # NOTE: D=32 / F=1024 is a correctness-sized toy; tune/benchmark at real
    # GPT-2 dims (multiples of 128, ideally 256 for v6e/v7x MXU).
    B, S, D = 2, 8, 32
    D_FF = 1024  # FeedForward default d_ff inside LLayer

    key = jax.random.PRNGKey(0)
    kx, kp = jax.random.split(key)
    x = jax.random.normal(kx, (B, S, D), jnp.float32)
    params = init_params(kp, D, D_FF)

    ref = reference_llayer(x, params)

    # f32 parity path (matches the PyTorch module up to the approx reciprocal).
    out_f32 = jax.block_until_ready(
        llayer_forward(x, params, compute_dtype=jnp.float32))
    assert out_f32.shape == (B, S, D)
    assert jnp.allclose(out_f32, ref, atol=5e-3, rtol=5e-3), "f32 mismatch vs reference"

    # bf16-fed-MXU production path (f32 accumulation) -> looser tolerance.
    out_bf16 = jax.block_until_ready(
        llayer_forward(x, params, compute_dtype=jnp.bfloat16))
    assert out_bf16.shape == (B, S, D)
    assert jnp.allclose(out_bf16, ref, atol=5e-2, rtol=5e-2), "bf16 mismatch vs reference"

    print("KERNEL_OK")
</pallas_src>

<mosaic_0001>
module attributes {stable_mosaic.version = 11 : i64} {
  func.func @llayer_kernel(%arg0: i32, %arg1: memref<8x32xf32, #tpu.memory_space<vmem>>, %arg2: memref<1x32xf32, #tpu.memory_space<vmem>>, %arg3: memref<1x32xf32, #tpu.memory_space<vmem>>, %arg4: memref<32x32xf32, #tpu.memory_space<vmem>>, %arg5: memref<1x32xf32, #tpu.memory_space<vmem>>, %arg6: memref<1x32xf32, #tpu.memory_space<vmem>>, %arg7: memref<1x32xf32, #tpu.memory_space<vmem>>, %arg8: memref<32x1024xf32, #tpu.memory_space<vmem>>, %arg9: memref<1x1024xf32, #tpu.memory_space<vmem>>, %arg10: memref<1024x32xf32, #tpu.memory_space<vmem>>, %arg11: memref<1x32xf32, #tpu.memory_space<vmem>>, %arg12: memref<8x32xf32, #tpu.memory_space<vmem>>) attributes {dimension_semantics = [#tpu.dimension_semantics<parallel>], iteration_bounds = array<i64: 2>, scalar_prefetch = 0 : i64, scratch_operands = 0 : i64, tpu.core_type = #tpu.core_type<tc>, window_params = [{transform_indices = @transform_0, window_bounds = array<i64: 8, 32>}, {pipeline_mode = #tpu.pipeline_mode<synchronous>, transform_indices = @transform_1, window_bounds = array<i64: 1, 32>}, {pipeline_mode = #tpu.pipeline_mode<synchronous>, transform_indices = @transform_2, window_bounds = array<i64: 1, 32>}, {pipeline_mode = #tpu.pipeline_mode<synchronous>, transform_indices = @transform_3, window_bounds = array<i64: 32, 32>}, {pipeline_mode = #tpu.pipeline_mode<synchronous>, transform_indices = @transform_4, window_bounds = array<i64: 1, 32>}, {pipeline_mode = #tpu.pipeline_mode<synchronous>, transform_indices = @transform_5, window_bounds = array<i64: 1, 32>}, {pipeline_mode = #tpu.pipeline_mode<synchronous>, transform_indices = @transform_6, window_bounds = array<i64: 1, 32>}, {pipeline_mode = #tpu.pipeline_mode<synchronous>, transform_indices = @transform_7, window_bounds = array<i64: 32, 1024>}, {pipeline_mode = #tpu.pipeline_mode<synchronous>, transform_indices = @transform_8, window_bounds = array<i64: 1, 1024>}, {pipeline_mode = #tpu.pipeline_mode<synchronous>, transform_indices = @transform_9, window_bounds = array<i64: 1024, 32>}, {pipeline_mode = #tpu.pipeline_mode<synchronous>, transform_indices = @transform_10, window_bounds = array<i64: 1, 32>}, {transform_indices = @transform_11, window_bounds = array<i64: 8, 32>}]} {
    %c0 = arith.constant 0 : index
    %c0_0 = arith.constant 0 : index
    %0 = vector.load %arg1[%c0, %c0_0] : memref<8x32xf32, #tpu.memory_space<vmem>>, vector<8x32xf32>
    %c0_1 = arith.constant 0 : index
    %c0_2 = arith.constant 0 : index
    %1 = vector.load %arg2[%c0_1, %c0_2] : memref<1x32xf32, #tpu.memory_space<vmem>>, vector<1x32xf32>
    %c0_3 = arith.constant 0 : index
    %c0_4 = arith.constant 0 : index
    %2 = vector.load %arg3[%c0_3, %c0_4] : memref<1x32xf32, #tpu.memory_space<vmem>>, vector<1x32xf32>
    %cst = arith.constant dense<0.000000e+00> : vector<8xf32>
    %3 = vector.multi_reduction <add>, %0, %cst [1] : vector<8x32xf32> to vector<8xf32>
    %4 = vector.shape_cast %3 : vector<8xf32> to vector<8x1xf32>
    %cst_5 = arith.constant 3.200000e+01 : f32
    %5 = vector.broadcast %cst_5 : f32 to vector<8x1xf32>
    %6 = arith.divf %4, %5 : vector<8x1xf32>
    %7 = vector.broadcast %6 : vector<8x1xf32> to vector<8x32xf32>
    %8 = arith.subf %0, %7 : vector<8x32xf32>
    %9 = arith.mulf %8, %8 : vector<8x32xf32>
    %cst_6 = arith.constant dense<0.000000e+00> : vector<8xf32>
    %10 = vector.multi_reduction <add>, %9, %cst_6 [1] : vector<8x32xf32> to vector<8xf32>
    %11 = vector.shape_cast %10 : vector<8xf32> to vector<8x1xf32>
    %cst_7 = arith.constant 0.0322580636 : f32
    %12 = vector.broadcast %cst_7 : f32 to vector<8x1xf32>
    %13 = arith.mulf %11, %12 : vector<8x1xf32>
    %14 = math.sqrt %13 : vector<8x1xf32>
    %cst_8 = arith.constant 9.99999997E-7 : f32
    %15 = vector.broadcast %cst_8 : f32 to vector<8x1xf32>
    %16 = arith.addf %14, %15 : vector<8x1xf32>
    %17 = tpu.reciprocal %16 {approx = true} : vector<8x1xf32> -> vector<8x1xf32>
    %18 = vector.broadcast %17 : vector<8x1xf32> to vector<8x32xf32>
    %19 = arith.mulf %8, %18 : vector<8x32xf32>
    %20 = vector.broadcast %1 : vector<1x32xf32> to vector<8x32xf32>
    %21 = arith.mulf %20, %19 : vector<8x32xf32>
    %22 = vector.broadcast %2 : vector<1x32xf32> to vector<8x32xf32>
    %23 = arith.addf %21, %22 : vector<8x32xf32>
    %c0_9 = arith.constant 0 : index
    %c0_10 = arith.constant 0 : index
    %24 = vector.load %arg4[%c0_9, %c0_10] : memref<32x32xf32, #tpu.memory_space<vmem>>, vector<32x32xf32>
    %cst_11 = arith.constant dense<0.000000e+00> : vector<8x32xf32>
    %25 = tpu.matmul %23, %24, %cst_11 {dimension_numbers = #tpu.dot_dimension_numbers<[1], [0], [0], [1], [0, 0, 1, 1], [], []>} : vector<8x32xf32>, vector<32x32xf32>, vector<8x32xf32> -> vector<8x32xf32>
    %26 = arith.addf %0, %25 : vector<8x32xf32>
    %c0_12 = arith.constant 0 : index
    %c0_13 = arith.constant 0 : index
    %27 = vector.load %arg5[%c0_12, %c0_13] : memref<1x32xf32, #tpu.memory_space<vmem>>, vector<1x32xf32>
    %28 = vector.broadcast %27 : vector<1x32xf32> to vector<8x32xf32>
    %29 = arith.addf %26, %28 : vector<8x32xf32>
    %c0_14 = arith.constant 0 : index
    %c0_15 = arith.constant 0 : index
    %30 = vector.load %arg6[%c0_14, %c0_15] : memref<1x32xf32, #tpu.memory_space<vmem>>, vector<1x32xf32>
    %c0_16 = arith.constant 0 : index
    %c0_17 = arith.constant 0 : index
    %31 = vector.load %arg7[%c0_16, %c0_17] : memref<1x32xf32, #tpu.memory_space<vmem>>, vector<1x32xf32>
    %cst_18 = arith.constant dense<0.000000e+00> : vector<8xf32>
    %32 = vector.multi_reduction <add>, %29, %cst_18 [1] : vector<8x32xf32> to vector<8xf32>
    %33 = vector.shape_cast %32 : vector<8xf32> to vector<8x1xf32>
    %cst_19 = arith.constant 3.200000e+01 : f32
    %34 = vector.broadcast %cst_19 : f32 to vector<8x1xf32>
    %35 = arith.divf %33, %34 : vector<8x1xf32>
    %36 = vector.broadcast %35 : vector<8x1xf32> to vector<8x32xf32>
    %37 = arith.subf %29, %36 : vector<8x32xf32>
    %38 = arith.mulf %37, %37 : vector<8x32xf32>
    %cst_20 = arith.constant dense<0.000000e+00> : vector<8xf32>
    %39 = vector.multi_reduction <add>, %38, %cst_20 [1] : vector<8x32xf32> to vector<8xf32>
    %40 = vector.shape_cast %39 : vector<8xf32> to vector<8x1xf32>
    %cst_21 = arith.constant 0.0322580636 : f32
    %41 = vector.broadcast %cst_21 : f32 to vector<8x1xf32>
    %42 = arith.mulf %40, %41 : vector<8x1xf32>
    %43 = math.sqrt %42 : vector<8x1xf32>
    %cst_22 = arith.constant 9.99999997E-7 : f32
    %44 = vector.broadcast %cst_22 : f32 to vector<8x1xf32>
    %45 = arith.addf %43, %44 : vector<8x1xf32>
    %46 = tpu.reciprocal %45 {approx = true} : vector<8x1xf32> -> vector<8x1xf32>
    %47 = vector.broadcast %46 : vector<8x1xf32> to vector<8x32xf32>
    %48 = arith.mulf %37, %47 : vector<8x32xf32>
    %49 = vector.broadcast %30 : vector<1x32xf32> to vector<8x32xf32>
    %50 = arith.mulf %49, %48 : vector<8x32xf32>
    %51 = vector.broadcast %31 : vector<1x32xf32> to vector<8x32xf32>
    %52 = arith.addf %50, %51 : vector<8x32xf32>
    %c0_23 = arith.constant 0 : index
    %c0_24 = arith.constant 0 : index
    %53 = vector.load %arg8[%c0_23, %c0_24] : memref<32x1024xf32, #tpu.memory_space<vmem>>, vector<32x1024xf32>
    %cst_25 = arith.constant dense<0.000000e+00> : vector<8x1024xf32>
    %54 = tpu.matmul %52, %53, %cst_25 {dimension_numbers = #tpu.dot_dimension_numbers<[1], [0], [0], [1], [0, 0, 1, 1], [], []>} : vector<8x32xf32>, vector<32x1024xf32>, vector<8x1024xf32> -> vector<8x1024xf32>
    %c0_26 = arith.constant 0 : index
    %c0_27 = arith.constant 0 : index
    %55 = vector.load %arg9[%c0_26, %c0_27] : memref<1x1024xf32, #tpu.memory_space<vmem>>, vector<1x1024xf32>
    %56 = vector.broadcast %55 : vector<1x1024xf32> to vector<8x1024xf32>
    %57 = arith.addf %54, %56 : vector<8x1024xf32>
    %cst_28 = arith.constant 5.000000e-01 : f32
    %58 = vector.broadcast %cst_28 : f32 to vector<8x1024xf32>
    %59 = arith.mulf %58, %57 : vector<8x1024xf32>
    %60 = arith.mulf %57, %57 : vector<8x1024xf32>
    %61 = arith.mulf %60, %57 : vector<8x1024xf32>
    %cst_29 = arith.constant 4.471500e-02 : f32
    %62 = vector.broadcast %cst_29 : f32 to vector<8x1024xf32>
    %63 = arith.mulf %62, %61 : vector<8x1024xf32>
    %64 = arith.addf %57, %63 : vector<8x1024xf32>
    %cst_30 = arith.constant 0.797884583 : f32
    %65 = vector.broadcast %cst_30 : f32 to vector<8x1024xf32>
    %66 = arith.mulf %65, %64 : vector<8x1024xf32>
    %67 = math.tanh %66 : vector<8x1024xf32>
    %cst_31 = arith.constant 1.000000e+00 : f32
    %68 = vector.broadcast %cst_31 : f32 to vector<8x1024xf32>
    %69 = arith.addf %68, %67 : vector<8x1024xf32>
    %70 = arith.mulf %59, %69 : vector<8x1024xf32>
    %c0_32 = arith.constant 0 : index
    %c0_33 = arith.constant 0 : index
    %71 = vector.load %arg10[%c0_32, %c0_33] : memref<1024x32xf32, #tpu.memory_space<vmem>>, vector<1024x32xf32>
    %cst_34 = arith.constant dense<0.000000e+00> : vector<8x32xf32>
    %72 = tpu.matmul %70, %71, %cst_34 {dimension_numbers = #tpu.dot_dimension_numbers<[1], [0], [0], [1], [0, 0, 1, 1], [], []>} : vector<8x1024xf32>, vector<1024x32xf32>, vector<8x32xf32> -> vector<8x32xf32>
    %73 = arith.addf %29, %72 : vector<8x32xf32>
    %c0_35 = arith.constant 0 : index
    %c0_36 = arith.constant 0 : index
    %74 = vector.load %arg11[%c0_35, %c0_36] : memref<1x32xf32, #tpu.memory_space<vmem>>, vector<1x32xf32>
    %75 = vector.broadcast %74 : vector<1x32xf32> to vector<8x32xf32>
    %76 = arith.addf %73, %75 : vector<8x32xf32>
    %c0_37 = arith.constant 0 : index
    %c0_38 = arith.constant 0 : index
    %77 = vector.load %arg12[%c0_37, %c0_38] : memref<8x32xf32, #tpu.memory_space<vmem>>, vector<8x32xf32>
    tpu.vector_store %arg12[%c0_37, %c0_38], %76 {strides = array<i32>} : memref<8x32xf32, #tpu.memory_space<vmem>>, vector<8x32xf32>,
    return
  }
  func.func @transform_0(%arg0: i32) -> (i32, i32) {
    %c0_i32 = arith.constant 0 : i32
    %c0_i32_0 = arith.constant 0 : i32
    return %arg0, %c0_i32 : i32, i32
  }
  func.func @transform_1(%arg0: i32) -> (i32, i32) {
    %c0_i32 = arith.constant 0 : i32
    %c0_i32_0 = arith.constant 0 : i32
    %c0_i32_1 = arith.constant 0 : i32
    return %c0_i32, %c0_i32_0 : i32, i32
  }
  func.func @transform_2(%arg0: i32) -> (i32, i32) {
    %c0_i32 = arith.constant 0 : i32
    %c0_i32_0 = arith.constant 0 : i32
    %c0_i32_1 = arith.constant 0 : i32
    return %c0_i32, %c0_i32_0 : i32, i32
  }
  func.func @transform_3(%arg0: i32) -> (i32, i32) {
    %c0_i32 = arith.constant 0 : i32
    %c0_i32_0 = arith.constant 0 : i32
    %c0_i32_1 = arith.constant 0 : i32
    return %c0_i32, %c0_i32_0 : i32, i32
  }
  func.func @transform_4(%arg0: i32) -> (i32, i32) {
    %c0_i32 = arith.constant 0 : i32
    %c0_i32_0 = arith.constant 0 : i32
    %c0_i32_1 = arith.constant 0 : i32
    return %c0_i32, %c0_i32_0 : i32, i32
  }
  func.func @transform_5(%arg0: i32) -> (i32, i32) {
    %c0_i32 = arith.constant 0 : i32
    %c0_i32_0 = arith.constant 0 : i32
    %c0_i32_1 = arith.constant 0 : i32
    return %c0_i32, %c0_i32_0 : i32, i32
  }
  func.func @transform_6(%arg0: i32) -> (i32, i32) {
    %c0_i32 = arith.constant 0 : i32
    %c0_i32_0 = arith.constant 0 : i32
    %c0_i32_1 = arith.constant 0 : i32
    return %c0_i32, %c0_i32_0 : i32, i32
  }
  func.func @transform_7(%arg0: i32) -> (i32, i32) {
    %c0_i32 = arith.constant 0 : i32
    %c0_i32_0 = arith.constant 0 : i32
    %c0_i32_1 = arith.constant 0 : i32
    return %c0_i32, %c0_i32_0 : i32, i32
  }
  func.func @transform_8(%arg0: i32) -> (i32, i32) {
    %c0_i32 = arith.constant 0 : i32
    %c0_i32_0 = arith.constant 0 : i32
    %c0_i32_1 = arith.constant 0 : i32
    return %c0_i32, %c0_i32_0 : i32, i32
  }
  func.func @transform_9(%arg0: i32) -> (i32, i32) {
    %c0_i32 = arith.constant 0 : i32
    %c0_i32_0 = arith.constant 0 : i32
    %c0_i32_1 = arith.constant 0 : i32
    return %c0_i32, %c0_i32_0 : i32, i32
  }
  func.func @transform_10(%arg0: i32) -> (i32, i32) {
    %c0_i32 = arith.constant 0 : i32
    %c0_i32_0 = arith.constant 0 : i32
    %c0_i32_1 = arith.constant 0 : i32
    return %c0_i32, %c0_i32_0 : i32, i32
  }
  func.func @transform_11(%arg0: i32) -> (i32, i32) {
    %c0_i32 = arith.constant 0 : i32
    %c0_i32_0 = arith.constant 0 : i32
    return %arg0, %c0_i32 : i32, i32
  }
}

module attributes {stable_mosaic.version = 11 : i64} {
  func.func @llayer_kernel(%arg0: i32, %arg1: memref<8x32xf32, #tpu.memory_space<vmem>>, %arg2: memref<1x32xf32, #tpu.memory_space<vmem>>, %arg3: memref<1x32xf32, #tpu.memory_space<vmem>>, %arg4: memref<32x32xf32, #tpu.memory_space<vmem>>, %arg5: memref<1x32xf32, #tpu.memory_space<vmem>>, %arg6: memref<1x32xf32, #tpu.memory_space<vmem>>, %arg7: memref<1x32xf32, #tpu.memory_space<vmem>>, %arg8: memref<32x1024xf32, #tpu.memory_space<vmem>>, %arg9: memref<1x1024xf32, #tpu.memory_space<vmem>>, %arg10: memref<1024x32xf32, #tpu.memory_space<vmem>>, %arg11: memref<1x32xf32, #tpu.memory_space<vmem>>, %arg12: memref<8x32xf32, #tpu.memory_space<vmem>>) attributes {dimension_semantics = [#tpu.dimension_semantics<parallel>], iteration_bounds = array<i64: 2>, scalar_prefetch = 0 : i64, scratch_operands = 0 : i64, tpu.core_type = #tpu.core_type<tc>, window_params = [{transform_indices = @transform_0, window_bounds = array<i64: 8, 32>}, {pipeline_mode = #tpu.pipeline_mode<synchronous>, transform_indices = @transform_1, window_bounds = array<i64: 1, 32>}, {pipeline_mode = #tpu.pipeline_mode<synchronous>, transform_indices = @transform_2, window_bounds = array<i64: 1, 32>}, {pipeline_mode = #tpu.pipeline_mode<synchronous>, transform_indices = @transform_3, window_bounds = array<i64: 32, 32>}, {pipeline_mode = #tpu.pipeline_mode<synchronous>, transform_indices = @transform_4, window_bounds = array<i64: 1, 32>}, {pipeline_mode = #tpu.pipeline_mode<synchronous>, transform_indices = @transform_5, window_bounds = array<i64: 1, 32>}, {pipeline_mode = #tpu.pipeline_mode<synchronous>, transform_indices = @transform_6, window_bounds = array<i64: 1, 32>}, {pipeline_mode = #tpu.pipeline_mode<synchronous>, transform_indices = @transform_7, window_bounds = array<i64: 32, 1024>}, {pipeline_mode = #tpu.pipeline_mode<synchronous>, transform_indices = @transform_8, window_bounds = array<i64: 1, 1024>}, {pipeline_mode = #tpu.pipeline_mode<synchronous>, transform_indices = @transform_9, window_bounds = array<i64: 1024, 32>}, {pipeline_mode = #tpu.pipeline_mode<synchronous>, transform_indices = @transform_10, window_bounds = array<i64: 1, 32>}, {transform_indices = @transform_11, window_bounds = array<i64: 8, 32>}]} {
    %c0 = arith.constant 0 : index
    %c0_0 = arith.constant 0 : index
    %0 = vector.load %arg1[%c0, %c0_0] : memref<8x32xf32, #tpu.memory_space<vmem>>, vector<8x32xf32>
    %c0_1 = arith.constant 0 : index
    %c0_2 = arith.constant 0 : index
    %1 = vector.load %arg2[%c0_1, %c0_2] : memref<1x32xf32, #tpu.memory_space<vmem>>, vector<1x32xf32>
    %c0_3 = arith.constant 0 : index
    %c0_4 = arith.constant 0 : index
    %2 = vector.load %arg3[%c0_3, %c0_4] : memref<1x32xf32, #tpu.memory_space<vmem>>, vector<1x32xf32>
    %cst = arith.constant dense<0.000000e+00> : vector<8xf32>
    %3 = vector.multi_reduction <add>, %0, %cst [1] : vector<8x32xf32> to vector<8xf32>
    %4 = vector.shape_cast %3 : vector<8xf32> to vector<8x1xf32>
    %cst_5 = arith.constant 3.200000e+01 : f32
    %5 = vector.broadcast %cst_5 : f32 to vector<8x1xf32>
    %6 = arith.divf %4, %5 : vector<8x1xf32>
    %7 = vector.broadcast %6 : vector<8x1xf32> to vector<8x32xf32>
    %8 = arith.subf %0, %7 : vector<8x32xf32>
    %9 = arith.mulf %8, %8 : vector<8x32xf32>
    %cst_6 = arith.constant dense<0.000000e+00> : vector<8xf32>
    %10 = vector.multi_reduction <add>, %9, %cst_6 [1] : vector<8x32xf32> to vector<8xf32>
    %11 = vector.shape_cast %10 : vector<8xf32> to vector<8x1xf32>
    %cst_7 = arith.constant 0.0322580636 : f32
    %12 = vector.broadcast %cst_7 : f32 to vector<8x1xf32>
    %13 = arith.mulf %11, %12 : vector<8x1xf32>
    %14 = math.sqrt %13 : vector<8x1xf32>
    %cst_8 = arith.constant 9.99999997E-7 : f32
    %15 = vector.broadcast %cst_8 : f32 to vector<8x1xf32>
    %16 = arith.addf %14, %15 : vector<8x1xf32>
    %17 = tpu.reciprocal %16 {approx = true} : vector<8x1xf32> -> vector<8x1xf32>
    %18 = vector.broadcast %17 : vector<8x1xf32> to vector<8x32xf32>
    %19 = arith.mulf %8, %18 : vector<8x32xf32>
    %20 = vector.broadcast %1 : vector<1x32xf32> to vector<8x32xf32>
    %21 = arith.mulf %20, %19 : vector<8x32xf32>
    %22 = vector.broadcast %2 : vector<1x32xf32> to vector<8x32xf32>
    %23 = arith.addf %21, %22 : vector<8x32xf32>
    %c0_9 = arith.constant 0 : index
    %c0_10 = arith.constant 0 : index
    %24 = vector.load %arg4[%c0_9, %c0_10] : memref<32x32xf32, #tpu.memory_space<vmem>>, vector<32x32xf32>
    %cst_11 = arith.constant dense<0.000000e+00> : vector<8x32xf32>
    %25 = tpu.matmul %23, %24, %cst_11 {dimension_numbers = #tpu.dot_dimension_numbers<[1], [0], [0], [1], [0, 0, 1, 1], [], []>} : vector<8x32xf32>, vector<32x32xf32>, vector<8x32xf32> -> vector<8x32xf32>
    %26 = arith.addf %0, %25 : vector<8x32xf32>
    %c0_12 = arith.constant 0 : index
    %c0_13 = arith.constant 0 : index
    %27 = vector.load %arg5[%c0_12, %c0_13] : memref<1x32xf32, #tpu.memory_space<vmem>>, vector<1x32xf32>
    %28 = vector.broadcast %27 : vector<1x32xf32> to vector<8x32xf32>
    %29 = arith.addf %26, %28 : vector<8x32xf32>
    %c0_14 = arith.constant 0 : index
    %c0_15 = arith.constant 0 : index
    %30 = vector.load %arg6[%c0_14, %c0_15] : memref<1x32xf32, #tpu.memory_space<vmem>>, vector<1x32xf32>
    %c0_16 = arith.constant 0 : index
    %c0_17 = arith.constant 0 : index
    %31 = vector.load %arg7[%c0_16, %c0_17] : memref<1x32xf32, #tpu.memory_space<vmem>>, vector<1x32xf32>
    %cst_18 = arith.constant dense<0.000000e+00> : vector<8xf32>
    %32 = vector.multi_reduction <add>, %29, %cst_18 [1] : vector<8x32xf32> to vector<8xf32>
    %33 = vector.shape_cast %32 : vector<8xf32> to vector<8x1xf32>
    %cst_19 = arith.constant 3.200000e+01 : f32
    %34 = vector.broadcast %cst_19 : f32 to vector<8x1xf32>
    %35 = arith.divf %33, %34 : vector<8x1xf32>
    %36 = vector.broadcast %35 : vector<8x1xf32> to vector<8x32xf32>
    %37 = arith.subf %29, %36 : vector<8x32xf32>
    %38 = arith.mulf %37, %37 : vector<8x32xf32>
    %cst_20 = arith.constant dense<0.000000e+00> : vector<8xf32>
    %39 = vector.multi_reduction <add>, %38, %cst_20 [1] : vector<8x32xf32> to vector<8xf32>
    %40 = vector.shape_cast %39 : vector<8xf32> to vector<8x1xf32>
    %cst_21 = arith.constant 0.0322580636 : f32
    %41 = vector.broadcast %cst_21 : f32 to vector<8x1xf32>
    %42 = arith.mulf %40, %41 : vector<8x1xf32>
    %43 = math.sqrt %42 : vector<8x1xf32>
    %cst_22 = arith.constant 9.99999997E-7 : f32
    %44 = vector.broadcast %cst_22 : f32 to vector<8x1xf32>
    %45 = arith.addf %43, %44 : vector<8x1xf32>
    %46 = tpu.reciprocal %45 {approx = true} : vector<8x1xf32> -> vector<8x1xf32>
    %47 = vector.broadcast %46 : vector<8x1xf32> to vector<8x32xf32>
    %48 = arith.mulf %37, %47 : vector<8x32xf32>
    %49 = vector.broadcast %30 : vector<1x32xf32> to vector<8x32xf32>
    %50 = arith.mulf %49, %48 : vector<8x32xf32>
    %51 = vector.broadcast %31 : vector<1x32xf32> to vector<8x32xf32>
    %52 = arith.addf %50, %51 : vector<8x32xf32>
    %c0_23 = arith.constant 0 : index
    %c0_24 = arith.constant 0 : index
    %53 = vector.load %arg8[%c0_23, %c0_24] : memref<32x1024xf32, #tpu.memory_space<vmem>>, vector<32x1024xf32>
    %cst_25 = arith.constant dense<0.000000e+00> : vector<8x1024xf32>
    %54 = tpu.matmul %52, %53, %cst_25 {dimension_numbers = #tpu.dot_dimension_numbers<[1], [0], [0], [1], [0, 0, 1, 1], [], []>} : vector<8x32xf32>, vector<32x1024xf32>, vector<8x1024xf32> -> vector<8x1024xf32>
    %c0_26 = arith.constant 0 : index
    %c0_27 = arith.constant 0 : index
    %55 = vector.load %arg9[%c0_26, %c0_27] : memref<1x1024xf32, #tpu.memory_space<vmem>>, vector<1x1024xf32>
    %56 = vector.broadcast %55 : vector<1x1024xf32> to vector<8x1024xf32>
    %57 = arith.addf %54, %56 : vector<8x1024xf32>
    %cst_28 = arith.constant 5.000000e-01 : f32
    %58 = vector.broadcast %cst_28 : f32 to vector<8x1024xf32>
    %59 = arith.mulf %58, %57 : vector<8x1024xf32>
    %60 = arith.mulf %57, %57 : vector<8x1024xf32>
    %61 = arith.mulf %60, %57 : vector<8x1024xf32>
    %cst_29 = arith.constant 4.471500e-02 : f32
    %62 = vector.broadcast %cst_29 : f32 to vector<8x1024xf32>
    %63 = arith.mulf %62, %61 : vector<8x1024xf32>
    %64 = arith.addf %57, %63 : vector<8x1024xf32>
    %cst_30 = arith.constant 0.797884583 : f32
    %65 = vector.broadcast %cst_30 : f32 to vector<8x1024xf32>
    %66 = arith.mulf %65, %64 : vector<8x1024xf32>
    %67 = math.tanh %66 : vector<8x1024xf32>
    %cst_31 = arith.constant 1.000000e+00 : f32
    %68 = vector.broadcast %cst_31 : f32 to vector<8x1024xf32>
    %69 = arith.addf %68, %67 : vector<8x1024xf32>
    %70 = arith.mulf %59, %69 : vector<8x1024xf32>
    %c0_32 = arith.constant 0 : index
    %c0_33 = arith.constant 0 : index
    %71 = vector.load %arg10[%c0_32, %c0_33] : memref<1024x32xf32, #tpu.memory_space<vmem>>, vector<1024x32xf32>
    %cst_34 = arith.constant dense<0.000000e+00> : vector<8x32xf32>
    %72 = tpu.matmul %70, %71, %cst_34 {dimension_numbers = #tpu.dot_dimension_numbers<[1], [0], [0], [1], [0, 0, 1, 1], [], []>} : vector<8x1024xf32>, vector<1024x32xf32>, vector<8x32xf32> -> vector<8x32xf32>
    %73 = arith.addf %29, %72 : vector<8x32xf32>
    %c0_35 = arith.constant 0 : index
    %c0_36 = arith.constant 0 : index
    %74 = vector.load %arg11[%c0_35, %c0_36] : memref<1x32xf32, #tpu.memory_space<vmem>>, vector<1x32xf32>
    %75 = vector.broadcast %74 : vector<1x32xf32> to vector<8x32xf32>
    %76 = arith.addf %73, %75 : vector<8x32xf32>
    %c0_37 = arith.constant 0 : index
    %c0_38 = arith.constant 0 : index
    %77 = vector.load %arg12[%c0_37, %c0_38] : memref<8x32xf32, #tpu.memory_space<vmem>>, vector<8x32xf32>
    tpu.vector_store %arg12[%c0_37, %c0_38], %76 {strides = array<i32>} : memref<8x32xf32, #tpu.memory_space<vmem>>, vector<8x32xf32>,
    return
  }
  func.func @transform_0(%arg0: i32) -> (i32, i32) {
    %c0_i32 = arith.constant 0 : i32
    %c0_i32_0 = arith.constant 0 : i32
    return %arg0, %c0_i32 : i32, i32
  }
  func.func @transform_1(%arg0: i32) -> (i32, i32) {
    %c0_i32 = arith.constant 0 : i32
    %c0_i32_0 = arith.constant 0 : i32
    %c0_i32_1 = arith.constant 0 : i32
    return %c0_i32, %c0_i32_0 : i32, i32
  }
  func.func @transform_2(%arg0: i32) -> (i32, i32) {
    %c0_i32 = arith.constant 0 : i32
    %c0_i32_0 = arith.constant 0 : i32
    %c0_i32_1 = arith.constant 0 : i32
    return %c0_i32, %c0_i32_0 : i32, i32
  }
  func.func @transform_3(%arg0: i32) -> (i32, i32) {
    %c0_i32 = arith.constant 0 : i32
    %c0_i32_0 = arith.constant 0 : i32
    %c0_i32_1 = arith.constant 0 : i32
    return %c0_i32, %c0_i32_0 : i32, i32
  }
  func.func @transform_4(%arg0: i32) -> (i32, i32) {
    %c0_i32 = arith.constant 0 : i32
    %c0_i32_0 = arith.constant 0 : i32
    %c0_i32_1 = arith.constant 0 : i32
    return %c0_i32, %c0_i32_0 : i32, i32
  }
  func.func @transform_5(%arg0: i32) -> (i32, i32) {
    %c0_i32 = arith.constant 0 : i32
    %c0_i32_0 = arith.constant 0 : i32
    %c0_i32_1 = arith.constant 0 : i32
    return %c0_i32, %c0_i32_0 : i32, i32
  }
  func.func @transform_6(%arg0: i32) -> (i32, i32) {
    %c0_i32 = arith.constant 0 : i32
    %c0_i32_0 = arith.constant 0 : i32
    %c0_i32_1 = arith.constant 0 : i32
    return %c0_i32, %c0_i32_0 : i32, i32
  }
  func.func @transform_7(%arg0: i32) -> (i32, i32) {
    %c0_i32 = arith.constant 0 : i32
    %c0_i32_0 = arith.constant 0 : i32
    %c0_i32_1 = arith.constant 0 : i32
    return %c0_i32, %c0_i32_0 : i32, i32
  }
  func.func @transform_8(%arg0: i32) -> (i32, i32) {
    %c0_i32 = arith.constant 0 : i32
    %c0_i32_0 = arith.constant 0 : i32
    %c0_i32_1 = arith.constant 0 : i32
    return %c0_i32, %c0_i32_0 : i32, i32
  }
  func.func @transform_9(%arg0: i32) -> (i32, i32) {
    %c0_i32 = arith.constant 0 : i32
    %c0_i32_0 = arith.constant 0 : i32
    %c0_i32_1 = arith.constant 0 : i32
    return %c0_i32, %c0_i32_0 : i32, i32
  }
  func.func @transform_10(%arg0: i32) -> (i32, i32) {
    %c0_i32 = arith.constant 0 : i32
    %c0_i32_0 = arith.constant 0 : i32
    %c0_i32_1 = arith.constant 0 : i32
    return %c0_i32, %c0_i32_0 : i32, i32
  }
  func.func @transform_11(%arg0: i32) -> (i32, i32) {
    %c0_i32 = arith.constant 0 : i32
    %c0_i32_0 = arith.constant 0 : i32
    return %arg0, %c0_i32 : i32, i32
  }
}

</mosaic_0001>

<bundles_post_ra>
// kernel: tpu_custom_call.1
= control target key start
LH: loop header
LB: loop body
LE: loop exit
PB: predicated region body
PF: predicated region fallthrough
CT: control target
= control target key end

     0   :  { %s2048_s0 = inlined_call_operand.vmem [shape: f32[16,32], index: 0, kind: input, shape index: {}]   ;;  %s2049_s1 = inlined_call_operand.vmem [shape: f32[1,32], index: 1, kind: input, shape index: {}]   ;;  %s2050_s2 = inlined_call_operand.vmem [shape: f32[1,32], index: 2, kind: input, shape index: {}]   ;;  %s2051_s3 = inlined_call_operand.vmem [shape: f32[32,32], index: 3, kind: input, shape index: {}]   ;;  %s2052_s4 = inlined_call_operand.vmem [shape: f32[1,32], index: 4, kind: input, shape index: {}]   ;;  %s2053_s5 = inlined_call_operand.vmem [shape: f32[1,32], index: 5, kind: input, shape index: {}]   ;;  %s2054_s6 = inlined_call_operand.vmem [shape: f32[1,32], index: 6, kind: input, shape index: {}]   ;;  %s2055_s7 = inlined_call_operand.vmem [shape: f32[32,1024], index: 7, kind: input, shape index: {}]   ;;  %s2056_s8 = inlined_call_operand.vmem [shape: f32[1,1024], index: 8, kind: input, shape index: {}]   ;;  %s2057_s9 = inlined_call_operand.vmem [shape: f32[1024,32], index: 9, kind: input, shape index: {}]   ;;  %s2058_s10 = inlined_call_operand.vmem [shape: f32[1,32], index: 10, kind: input, shape index: {}]   ;;  %s2059_s11 = inlined_call_operand.hbm [shape: f32[16,32], index: 11, kind: output, shape index: {}]  }
   0x1   :  { %2060 = sst [smem:[#allocation5_spill]] %s2048_s0 }
   0x2   :  { %16 = vsyncpa [#allocation3], 0 }
   0x3   :  { %18 = vsyncpa [#allocation3 + $0x1], 0  ;;  %s1365_s17 = smov 0   ;;  %s1367_s18 = smov 0  }
   0x4   :  { %s1369_s19 = smov 0   ;;  %s1371_s20 = smov 0  }
   0x5 LB: > { %s1386_s21 = sadd.s32 4294967295, %s1302_s20   ;;  %s1149_s22 = sadd.s32 4294967294, %s1302_s20   ;;  %s1302_s20 = sphi %s1371_s20, %s2067_s20   ;;  %s1298_s19 = sphi %s1369_s19, %s2066_s19   ;;  %s1294_s18 = sphi %s1367_s18, %s2065_s18   ;;  %s1290_s17 = sphi %s1365_s17, %s2064_s17  }
   0x6   : > { %s1390_s23 = sadd.s32 1, %s1302_s20   ;;  %s267_s24 = sadd.s32 1, %s1298_s19 }
   0x7   : > { %s264_s25 = ssub.s32 %s1302_s20, %s1390_s23  ;;  %p277_p0 = scmp.ne.s32.totalorder %s1298_s19, %s1294_s18 }
   0x8   : > { %p265_p1 = scmp.eq.s32.totalorder %s264_s25, 0  ;;  %p278_p2 = scmp.eq.s32.totalorder %s1386_s21, 1 }
   0x9   : > { %p283_p3 = scmp.ne.s32.totalorder %s1294_s18, %s1290_s17  ;;  %p284_p4 = scmp.eq.s32.totalorder %s1149_s22, 1 }
   0xa   : > { %s1401_s26 = scalar_select %p265_p1, %s1298_s19, %s267_s24  }
   0xb   : > { %p1403_p5 = por %p278_p2, %p277_p0  ;;  %p1407_p6 = por %p284_p4, %p283_p3 }
   0xc   : > { %p1152_p7 = scmp.ge.s32.totalorder %s1302_s20, 1  ;;  %p339_p8 = scmp.lt.s32.totalorder %s1302_s20, 3 }
   0xe   : > { %p340_p9 = pnand %p1152_p7, %p339_p8 }
   0xf   : > { %p378_p10 = scmp.lt.s32.totalorder (!%p340_p9), %s1386_s21, 1  ;;  %s2063_s0 = sld [smem:[#allocation5_spill]] (!%p340_p9) }
  0x10   : > { %343 = sbr.rel (%p340_p9) target bundleno = 1020 (0x3fc), region = 64  ;;  %s375_s15 = sand.u32 (!%p340_p9), 1, %s1294_s18  }
  0x11   : > { %s1153_s16 = sshll.u32 (!%p340_p9), %s375_s15, 3  ;;  %s1165_s22 = sshll.u32 (!%p340_p9), %s1386_s21, 3 }
  0x12   : > { %s377_s13 = scalar_lea.vmem (!%p340_p9), [#allocation2], %s1153_s16  ;;  %s1260_s16 = scalar_lea.hbm (!%p340_p9), %s2059_s11, 16 }
  0x15   : > { %s379_s29 = scalar_select %p378_p10, %s1386_s21, 1  ;;  %vm385_vm0 = vcmask 261120   ;;  %v1304_v2 = vmov 32.0   ;;  %v429_v14 = vld [vmem:[%s2051_s3 + $0x18] sm:$0xff]  ;;  %v428_v15 = vld [vmem:[%s2051_s3 + $0x10] sm:$0xff]  ;;  %v427_v16 = vld [vmem:[%s2051_s3 + $0x8] sm:$0xff] }
  0x16   : > { %1214 = vrcp.f32 %v1304_v2  ;;  %445 = vmatpush.msra.mxu0 %v429_v14  ;;  %v426_v17 = vld [vmem:[%s2051_s3] sm:$0xff]  ;;  %v519_v48 = vld [vmem:[%s2055_s7 + $0xc8] sm:$0xff]  ;;  %v520_v49 = vld [vmem:[%s2055_s7 + $0xd0] sm:$0xff]  ;;  %s1075_s21 = scalar_lea.sflag [#allocation3], %s375_s15 }
  0x17   : > { %s1154_s30 = sshll.u32 %s379_s29, 3  ;;  %v1208_v31 = vld [vmem:[%s2049_s1] ss:$0 sm:$0xff]  ;;  %579 = vmatpush.msra.mxu2 %v519_v48  ;;  %v521_v51 = vld [vmem:[%s2055_s7 + $0xd8] sm:$0xff]  ;;  %599 = vmatpush.msra.mxu3 %v520_v49  ;;  %v511_v54 = vld [vmem:[%s2055_s7 + $0x88] sm:$0xff]  ;;  %s1085_s29 = scalar_lea.hbm %s2059_s11, %s1165_s22 }
  0x18   : > { %s381_s14 = scalar_lea.vmem %s2063_s0, %s1154_s30  ;;  %446 = vmatpush.msra.mxu0 %v428_v15  ;;  %v1209_v34 = vld [vmem:[%s2050_s2] ss:$0 sm:$0xff]  ;;  %v512_v55 = vld [vmem:[%s2055_s7 + $0x90] sm:$0xff]  ;;  %v513_v56 = vld [vmem:[%s2055_s7 + $0x98] sm:$0xff]  ;;  %s1089_s0 = sshll.u32 %s1085_s29, 4  ;;  %s1090_s0 = int_to_ptr.hbm [resolvable:$true] %s1089_s0 }
  0x19   : > { %v382_v0 = vld [vmem:[%s381_s14] sm:$0xff]  ;;  %580 = vmatpush.msra.mxu2 %v511_v54  ;;  %v503_v58 = vld [vmem:[%s2055_s7 + $0x48] sm:$0xff]  ;;  %600 = vmatpush.msra.mxu3 %v512_v55  ;;  %v504_v59 = vld [vmem:[%s2055_s7 + $0x50] sm:$0xff]  ;;  %s1087_s14 = sshll.u32 %s377_s13, 4  ;;  %s1254_s24 = sshra.s32 %s1090_s0, 4  ;;  %s1088_s14 = int_to_ptr.vmem [resolvable:$true] %s1087_s14  ;;  %s1255_s24 = int_to_ptr.hbm [resolvable:$true] %s1254_s24 }
  0x1a   : > { %v386_v1 = vsel %vm385_vm0, %v382_v0, 0.0  ;;  %447 = vmatpush.msra.mxu0 %v427_v16  ;;  %v1210_v37 = vld [vmem:[%s2052_s4] ss:$0 sm:$0xff]  ;;  %v505_v60 = vld [vmem:[%s2055_s7 + $0x58] sm:$0xff]  ;;  %v495_v62 = vld [vmem:[%s2055_s7 + $0x8] sm:$0xff]  ;;  %s1256_s22 = scalar_lea.hbm %s1255_s24, 8  ;;  %p1261_p0 = scmp.lt.s32.totalorder %s1255_s24, %s2059_s11 }
  0x1b   : > { %387 = vadd.xlane.f32.xlu0 %v386_v1  ;;  %v518_v47 = vld [vmem:[%s2055_s7 + $0xc0] sm:$0xff]  ;;  %581 = vmatpush.msra.mxu2 %v503_v58  ;;  %v496_v63 = vld [vmem:[%s2055_s7 + $0x10] sm:$0xff]  ;;  %v523_v1 = vld [vmem:[%s2055_s7 + $0xe8] sm:$0xff]  ;;  %p1257_p11 = scmp.ne.s32.totalorder %s1255_s24, %s1256_s22  ;;  %p1262_p1 = scmp.lt.s32.totalorder %s1260_s16, %s1256_s22 }
  0x1c   : > { %v1215_v3 = vpop.eup %1214  ;;  %448 = vmatpush.msra.mxu0 %v426_v17  ;;  %559 = vmatpush.msra.mxu1 %v518_v47  ;;  %v510_v53 = vld [vmem:[%s2055_s7 + $0x80] sm:$0xff]  ;;  %v509_v14 = vld [vmem:[%s2055_s7 + $0x78] sm:$0xff]  ;;  %v499_v16 = vld [vmem:[%s2055_s7 + $0x28] sm:$0xff] }
  0x1d   : > { %v390_v4 = vmul.f32 32.0, %v1215_v3  ;;  %vm394_vm1 = vweird.f32 %v1215_v3  ;;  %v502_v57 = vld [vmem:[%s2055_s7 + $0x40] sm:$0xff]  ;;  %601 = vmatpush.msra.mxu3 %v504_v59  ;;  %582 = vmatpush.msra.mxu2 %v495_v62  ;;  %v822_v54 = vld [vmem:[%s2057_s9 + $0x158] sm:$0xff]  ;;  %v789_v55 = vld [vmem:[%s2057_s9 + $0x50] sm:$0xff]  ;;  %p1258_p12 = pnand %p1257_p11, %p1403_p5  ;;  %p1263_p2 = por %p1262_p1, %p1261_p0 }
  0x1e   : > { %619 = vmatpush.msrb.mxu0 %v521_v51  ;;  %560 = vmatpush.msra.mxu1 %v510_v53  ;;  %v494_v61 = vld [vmem:[%s2055_s7] sm:$0xff]  ;;  %v790_v51 = vld [vmem:[%s2057_s9 + $0x58] sm:$0xff]  ;;  %v821_v58 = vld [vmem:[%s2057_s9 + $0x150] sm:$0xff] }
  0x1f   : > { %v391_v5 = vsub.f32 1.0, %v390_v4  ;;  %602 = vmatpush.msra.mxu3 %v496_v63  ;;  %v522_v2 = vld [vmem:[%s2055_s7 + $0xe0] sm:$0xff]  ;;  %659 = vmatpush.msrb.mxu2 %v523_v1  ;;  %v806_v53 = vld [vmem:[%s2057_s9 + $0xd8] sm:$0xff]  ;;  %v788_v59 = vld [vmem:[%s2057_s9 + $0x48] sm:$0xff]  ;;  %p1259_p13 = pneg %p1258_p12 }
  0x20   : > { %620 = vmatpush.msrb.mxu0 %v513_v56  ;;  %561 = vmatpush.msra.mxu1 %v502_v57  ;;  %v498_v17 = vld [vmem:[%s2055_s7 + $0x20] sm:$0xff]  ;;  %v837_v56 = vld [vmem:[%s2057_s9 + $0x1d0] sm:$0xff]  ;;  %v820_v62 = vld [vmem:[%s2057_s9 + $0x148] sm:$0xff] }
  0x21   : > { %v392_v6 = vmul.f32 %v1215_v3, %v391_v5  ;;  %v525_v5 = vld [vmem:[%s2055_s7 + $0xf8] sm:$0xff]  ;;  %v791_v47 = vld [vmem:[%s2057_s9 + $0x60] sm:$0xff]  ;;  %v805_v57 = vld [vmem:[%s2057_s9 + $0xd0] sm:$0xff]  ;;  %p1264_p3 = pnand %p1263_p2, %p1259_p13 }
  0x22   : > { %621 = vmatpush.msrb.mxu0 %v505_v60  ;;  %562 = vmatpush.msra.mxu1 %v494_v61  ;;  %v839_v48 = vld [vmem:[%s2057_s9 + $0x1e0] sm:$0xff]  ;;  %v836_v60 = vld [vmem:[%s2057_s9 + $0x1c8] sm:$0xff] }
  0x23   : > { %v393_v7 = vadd.f32 %v1215_v3, %v392_v6  ;;  %v515_v6 = vld [vmem:[%s2055_s7 + $0xa8] sm:$0xff]  ;;  %v807_v49 = vld [vmem:[%s2057_s9 + $0xe0] sm:$0xff] }
  0x24   : > { %639 = vmatpush.msrb.mxu1 %v522_v2  ;;  %660 = vmatpush.msrb.mxu2 %v515_v6  ;;  %v804_v61 = vld [vmem:[%s2057_s9 + $0xc8] sm:$0xff]  ;;  %v787_v63 = vld [vmem:[%s2057_s9 + $0x40] sm:$0xff]  ;;  %v818_v6 = vld [vmem:[%s2057_s9 + $0x138] sm:$0xff] }
  0x25   : > { %v395_v8 = vsel %vm394_vm1, %v1215_v3, %v393_v7  ;;  %v524_v3 = vld [vmem:[%s2055_s7 + $0xf0] sm:$0xff]  ;;  %v514_v7 = vld [vmem:[%s2055_s7 + $0xa0] sm:$0xff] }
  0x26   : > { %679 = vmatpush.msrb.mxu3 %v524_v3  ;;  %640 = vmatpush.msrb.mxu1 %v514_v7  ;;  %v803_v1 = vld [vmem:[%s2057_s9 + $0xc0] sm:$0xff]  ;;  %v786_v3 = vld [vmem:[%s2057_s9 + $0x38] sm:$0xff]  ;;  %v785_v7 = vld [vmem:[%s2057_s9 + $0x30] sm:$0xff] }
  0x27   : > { %v819_v2 = vld [vmem:[%s2057_s9 + $0x140] sm:$0xff] }
  0x8e   : > { %v388_v9 = vpop.xlane.xlu0 %387 }
  0x8f   : > { %v396_v10 = vmul.f32 %v395_v8, %v388_v9  ;;  %v516_v9 = vld [vmem:[%s2055_s7 + $0xb0] sm:$0xff] }
  0x90   : > { %680 = vmatpush.msrb.mxu3 %v516_v9  ;;  %v801_v9 = vld [vmem:[%s2057_s9 + $0xb0] sm:$0xff] }
  0x91   : > { %v397_v11 = vsub.f32 %v382_v0, %v396_v10  ;;  %v517_v10 = vld [vmem:[%s2055_s7 + $0xb8] sm:$0xff] }
  0x93   : > { %v398_v12 = vmul.f32 %v397_v11, %v397_v11 }
  0x95   : > { %v399_v13 = vsel %vm385_vm0, %v398_v12, 0.0  ;;  %v506_v12 = vld [vmem:[%s2055_s7 + $0x60] sm:$0xff] }
  0x96   : > { %400 = vadd.xlane.f32.xlu0 %v399_v13  ;;  %v508_v13 = vld [vmem:[%s2055_s7 + $0x70] sm:$0xff]  ;;  %641 = vmatpush.msrb.mxu1 %v506_v12  ;;  %v832_v12 = vld [vmem:[%s2057_s9 + $0x1a8] sm:$0xff] }
  0x97   : > { %681 = vmatpush.msrb.mxu3 %v508_v13  ;;  %v800_v13 = vld [vmem:[%s2057_s9 + $0xa8] sm:$0xff] }
  0x98   : > { %642 = vmatpush.msrb.mxu1 %v498_v17  ;;  %v799_v17 = vld [vmem:[%s2057_s9 + $0xa0] sm:$0xff] }
 0x109   : > { %v401_v18 = vpop.xlane.xlu0 %400 }
 0x10a   : > { %v402_v19 = vmul.f32 0.032258064, %v401_v18  ;;  %v500_v18 = vld [vmem:[%s2055_s7 + $0x30] sm:$0xff] }
 0x10b   : > { %682 = vmatpush.msrb.mxu3 %v500_v18  ;;  %v815_v18 = vld [vmem:[%s2057_s9 + $0x120] sm:$0xff] }
 0x10c   : > { %1216 = vrsqrt.f32 %v402_v19  ;;  %vm410_vm2 = vcmp.eq.f32.partialorder %v402_v19, inf  ;;  %v413_v27 = vand.u32 2147483648, %v402_v19  ;;  %vm412_vm3 = vcmp.eq.f32.partialorder %v402_v19, 0.0 }
 0x112   : > { %v1217_v20 = vpop.eup %1216 }
 0x113   : > { %v404_v21 = vmul.f32 %v1217_v20, %v402_v19 }
 0x115   : > { %v405_v22 = vmul.f32 %v1217_v20, %v404_v21 }
 0x117   : > { %v406_v23 = vmul.f32 0.5, %v405_v22 }
 0x119   : > { %v407_v24 = vsub.f32 1.5, %v406_v23 }
 0x11b   : > { %v408_v25 = vmul.f32 %v1217_v20, %v407_v24 }
 0x11d   : > { %v409_v26 = vmul.f32 %v408_v25, %v402_v19 }
 0x11f   : > { %v411_v28 = vsel %vm410_vm2, %v402_v19, %v409_v26  ;;  %v501_v19 = vld [vmem:[%s2055_s7 + $0x38] sm:$0xff] }
 0x120   : > { %v414_v29 = vsel %vm412_vm3, %v413_v27, %v411_v28  ;;  %v1211_v28 = vld [vmem:[%s2053_s5] ss:$0 sm:$0xff] }
 0x121   : > { %v415_v30 = vadd.f32 1e-06, %v414_v29 }
 0x123   : > { %1218 = vrcp.f32 %v415_v30 }
 0x129   : > { %v1219_v32 = vpop.eup %1218 }
 0x12a   : > { %v417_v33 = vmul.f32 %v1219_v32, %v397_v11  ;;  %v507_v11 = vld [vmem:[%s2055_s7 + $0x68] sm:$0xff] }
 0x12b   : > { %661 = vmatpush.msrb.mxu2 %v507_v11  ;;  %v784_v11 = vld [vmem:[%s2057_s9 + $0x28] sm:$0xff] }
 0x12c   : > { %v421_v35 = vmul.f32 %v1208_v31, %v417_v33  ;;  %v1212_v31 = vld [vmem:[%s2054_s6] ss:$0 sm:$0xff] }
 0x12d   : > { %662 = vmatpush.msrb.mxu2 %v499_v16  ;;  %v831_v16 = vld [vmem:[%s2057_s9 + $0x1a0] sm:$0xff] }
 0x12e   : > { %v425_v36 = vadd.f32 %v1209_v34, %v421_v35  ;;  %v794_v34 = vld [vmem:[%s2057_s9 + $0x78] sm:$0xff] }
 0x12f   : > { %v842_v35 = vld [vmem:[%s2057_s9 + $0x1f8] sm:$0xff] }
 0x130   : > { %1155 = vmatmul.msk.f32.vlgmr.msra.gmra.mxu0 %vm385_vm0, %v425_v36  ;;  %v810_v36 = vld [vmem:[%s2057_s9 + $0xf8] sm:$0xff] }
 0x1ad   : > { %v450_v38 = vpop.f32.mrf.mxu0 }
 0x1ae   : > { %v453_v39 = vadd.f32 %v450_v38, %v382_v0  ;;  %v497_v0 = vld [vmem:[%s2055_s7 + $0x18] sm:$0xff]  ;;  %v793_v38 = vld [vmem:[%s2057_s9 + $0x70] sm:$0xff] }
 0x1af   : > { %622 = vmatpush.msrb.mxu0 %v497_v0  ;;  %v835_v0 = vld [vmem:[%s2057_s9 + $0x1c0] sm:$0xff] }
 0x1b0   : > { %v1442_v40 = vadd.f32 %v1210_v37, %v453_v39  ;;  %v826_v37 = vld [vmem:[%s2057_s9 + $0x178] sm:$0xff]  ;;  %v841_v39 = vld [vmem:[%s2057_s9 + $0x1f0] sm:$0xff] }
 0x1b1   : > { %699 = vmatpush.msra.mxu0 %v525_v5  ;;  %v802_v5 = vld [vmem:[%s2057_s9 + $0xb8] sm:$0xff] }
 0x1b2   : > { %v461_v41 = vsel %vm385_vm0, %v1442_v40, 0.0 }
 0x1b3   : > { %462 = vadd.xlane.f32.xlu1 %v461_v41  ;;  %700 = vmatpush.msra.mxu0 %v517_v10  ;;  %v809_v41 = vld [vmem:[%s2057_s9 + $0xf0] sm:$0xff] }
 0x1b4   : > { %v817_v10 = vld [vmem:[%s2057_s9 + $0x130] sm:$0xff] }
 0x1b5   : > { %701 = vmatpush.msra.mxu0 %v509_v14  ;;  %v816_v14 = vld [vmem:[%s2057_s9 + $0x128] sm:$0xff] }
 0x1b7   : > { %702 = vmatpush.msra.mxu0 %v501_v19  ;;  %v782_v19 = vld [vmem:[%s2057_s9 + $0x18] sm:$0xff] }
 0x226   : > { %v463_v42 = vpop.xlane.xlu1 %462 }
 0x227   : > { %v464_v43 = vmul.f32 %v463_v42, %v395_v8  ;;  %v825_v42 = vld [vmem:[%s2057_s9 + $0x170] sm:$0xff] }
 0x229   : > { %v1447_v44 = vsub.f32 %v1442_v40, %v464_v43  ;;  %v792_v43 = vld [vmem:[%s2057_s9 + $0x68] sm:$0xff] }
 0x22b   : > { %v466_v45 = vmul.f32 %v1447_v44, %v1447_v44 }
 0x22d   : > { %v467_v46 = vsel %vm385_vm0, %v466_v45, 0.0  ;;  %v808_v45 = vld [vmem:[%s2057_s9 + $0xe8] sm:$0xff] }
 0x22e   : > { %468 = vadd.xlane.f32.xlu1 %v467_v46  ;;  %v824_v46 = vld [vmem:[%s2057_s9 + $0x168] sm:$0xff] }
 0x2a1   : > { %v469_v50 = vpop.xlane.xlu1 %468 }
 0x2a2   : > { %v1464_v52 = vmul.f32 0.032258064, %v469_v50  ;;  %v823_v50 = vld [vmem:[%s2057_s9 + $0x160] sm:$0xff] }
 0x2a4   : > { %1220 = vrsqrt.f32 %v1464_v52  ;;  %vm478_vm4 = vcmp.eq.f32.partialorder %v1464_v52, inf  ;;  %v481_v24 = vand.u32 2147483648, %v1464_v52  ;;  %vm480_vm5 = vcmp.eq.f32.partialorder %v1464_v52, 0.0 }
 0x2aa   : > { %v1221_v4 = vpop.eup %1220 }
 0x2ab   : > { %v472_v8 = vmul.f32 %v1221_v4, %v1464_v52 }
 0x2ad   : > { %v473_v15 = vmul.f32 %v1221_v4, %v472_v8  ;;  %v833_v8 = vld [vmem:[%s2057_s9 + $0x1b0] sm:$0xff] }
 0x2af   : > { %v474_v20 = vmul.f32 0.5, %v473_v15  ;;  %v783_v15 = vld [vmem:[%s2057_s9 + $0x20] sm:$0xff] }
 0x2b1   : > { %v475_v21 = vsub.f32 1.5, %v474_v20  ;;  %v830_v20 = vld [vmem:[%s2057_s9 + $0x198] sm:$0xff] }
 0x2b3   : > { %v476_v22 = vmul.f32 %v1221_v4, %v475_v21  ;;  %v834_v4 = vld [vmem:[%s2057_s9 + $0x1b8] sm:$0xff]  ;;  %v781_v21 = vld [vmem:[%s2057_s9 + $0x10] sm:$0xff] }
 0x2b5   : > { %v477_v23 = vmul.f32 %v476_v22, %v1464_v52  ;;  %v829_v22 = vld [vmem:[%s2057_s9 + $0x190] sm:$0xff] }
 0x2b7   : > { %v479_v25 = vsel %vm478_vm4, %v1464_v52, %v477_v23  ;;  %v838_v52 = vld [vmem:[%s2057_s9 + $0x1d8] sm:$0xff]  ;;  %v780_v23 = vld [vmem:[%s2057_s9 + $0x8] sm:$0xff] }
 0x2b8   : > { %v482_v26 = vsel %vm480_vm5, %v481_v24, %v479_v25  ;;  %v828_v24 = vld [vmem:[%s2057_s9 + $0x188] sm:$0xff]  ;;  %v779_v25 = vld [vmem:[%s2057_s9] sm:$0xff] }
 0x2b9   : > { %v483_v27 = vadd.f32 1e-06, %v482_v26  ;;  %v798_v26 = vld [vmem:[%s2057_s9 + $0x98] sm:$0xff] }
 0x2bb   : > { %1222 = vrcp.f32 %v483_v27  ;;  %v814_v27 = vld [vmem:[%s2057_s9 + $0x118] sm:$0xff] }
 0x2c1   : > { %v1223_v29 = vpop.eup %1222 }
 0x2c2   : > { %v485_v30 = vmul.f32 %v1223_v29, %v1447_v44  ;;  %v840_v44 = vld [vmem:[%s2057_s9 + $0x1e8] sm:$0xff]  ;;  %v858_v29 = vld [vmem:[%s2057_s9 + $0x278] sm:$0xff] }
 0x2c4   : > { %v489_v32 = vmul.f32 %v1211_v28, %v485_v30  ;;  %v827_v28 = vld [vmem:[%s2057_s9 + $0x180] sm:$0xff]  ;;  %v906_v30 = vld [vmem:[%s2057_s9 + $0x3f8] sm:$0xff] }
 0x2c6   : > { %v493_v33 = vadd.f32 %v1212_v31, %v489_v32  ;;  %v797_v31 = vld [vmem:[%s2057_s9 + $0x90] sm:$0xff] }
 0x2c7   : > { %v813_v32 = vld [vmem:[%s2057_s9 + $0x110] sm:$0xff] }
 0x2c8   : > { %1156 = vmatmul.msk.f32.vlgmr.msra.gmra.mxu1 %vm385_vm0, %v493_v33  ;;  %1157 = vmatmul.msk.f32.vlgmr.msra.gmra.mxu2 %vm385_vm0, %v493_v33 }
 0x2c9   : > { %1158 = vmatmul.msk.f32.vlgmr.msra.gmra.mxu3 %vm385_vm0, %v493_v33  ;;  %1159 = vmatmul.msk.f32.vlgmr.msrb.gmra.mxu0 %vm385_vm0, %v493_v33 }
 0x2ca   : > { %907 = vmatpush.msra.mxu1 %v794_v34  ;;  %967 = vmatpush.msrb.mxu0 %v842_v35  ;;  %v905_v34 = vld [vmem:[%s2057_s9 + $0x3f0] sm:$0xff]  ;;  %v796_v35 = vld [vmem:[%s2057_s9 + $0x88] sm:$0xff] }
 0x2cb   : > { %927 = vmatpush.msra.mxu2 %v810_v36  ;;  %947 = vmatpush.msra.mxu3 %v826_v37  ;;  %v812_v36 = vld [vmem:[%s2057_s9 + $0x108] sm:$0xff] }
 0x2cc   : > { %908 = vmatpush.msra.mxu1 %v793_v38  ;;  %968 = vmatpush.msrb.mxu0 %v841_v39  ;;  %v856_v37 = vld [vmem:[%s2057_s9 + $0x268] sm:$0xff]  ;;  %v795_v39 = vld [vmem:[%s2057_s9 + $0x80] sm:$0xff] }
 0x2cd   : > { %928 = vmatpush.msra.mxu2 %v809_v41  ;;  %948 = vmatpush.msra.mxu3 %v825_v42  ;;  %v904_v38 = vld [vmem:[%s2057_s9 + $0x3e8] sm:$0xff]  ;;  %v811_v41 = vld [vmem:[%s2057_s9 + $0x100] sm:$0xff] }
 0x2ce   : > { %909 = vmatpush.msra.mxu1 %v792_v43  ;;  %969 = vmatpush.msrb.mxu0 %v840_v44  ;;  %v855_v42 = vld [vmem:[%s2057_s9 + $0x260] sm:$0xff]  ;;  %v874_v43 = vld [vmem:[%s2057_s9 + $0x2f8] sm:$0xff] }
 0x2cf   : > { %929 = vmatpush.msra.mxu2 %v808_v45  ;;  %949 = vmatpush.msra.mxu3 %v824_v46  ;;  %v890_v44 = vld [vmem:[%s2057_s9 + $0x378] sm:$0xff]  ;;  %v903_v45 = vld [vmem:[%s2057_s9 + $0x3e0] sm:$0xff] }
 0x2d0   : > { %1160 = vmatmul.msk.f32.vlgmr.msrb.gmra.mxu1 %vm385_vm0, %v493_v33  ;;  %1161 = vmatmul.msk.f32.vlgmr.msrb.gmra.mxu2 %vm385_vm0, %v493_v33  ;;  %v854_v46 = vld [vmem:[%s2057_s9 + $0x258] sm:$0xff] }
 0x2d1   : > { %1162 = vmatmul.msk.f32.vlgmr.msrb.gmra.mxu3 %vm385_vm0, %v493_v33  ;;  %1163 = vmatmul.msk.f32.vlgmr.msra.gmra.mxu0 %vm385_vm0, %v493_v33  ;;  %v857_v33 = vld [vmem:[%s2057_s9 + $0x270] sm:$0xff] }
 0x2d2   : > { %910 = vmatpush.msra.mxu1 %v791_v47  ;;  %970 = vmatpush.msrb.mxu0 %v839_v48  ;;  %v873_v47 = vld [vmem:[%s2057_s9 + $0x2f0] sm:$0xff] }
 0x2d3   : > { %930 = vmatpush.msra.mxu2 %v807_v49  ;;  %950 = vmatpush.msra.mxu3 %v823_v50  ;;  %v889_v48 = vld [vmem:[%s2057_s9 + $0x370] sm:$0xff]  ;;  %v902_v49 = vld [vmem:[%s2057_s9 + $0x3d8] sm:$0xff] }
 0x2d4   : > { %911 = vmatpush.msra.mxu1 %v790_v51  ;;  %971 = vmatpush.msrb.mxu0 %v838_v52  ;;  %v853_v50 = vld [vmem:[%s2057_s9 + $0x250] sm:$0xff]  ;;  %v872_v51 = vld [vmem:[%s2057_s9 + $0x2e8] sm:$0xff] }
 0x2d5   : > { %931 = vmatpush.msra.mxu2 %v806_v53  ;;  %951 = vmatpush.msra.mxu3 %v822_v54  ;;  %v888_v52 = vld [vmem:[%s2057_s9 + $0x368] sm:$0xff]  ;;  %v901_v53 = vld [vmem:[%s2057_s9 + $0x3d0] sm:$0xff] }
 0x2d6   : > { %912 = vmatpush.msra.mxu1 %v789_v55  ;;  %972 = vmatpush.msrb.mxu0 %v837_v56  ;;  %v852_v54 = vld [vmem:[%s2057_s9 + $0x248] sm:$0xff]  ;;  %v871_v55 = vld [vmem:[%s2057_s9 + $0x2e0] sm:$0xff] }
 0x2d7   : > { %932 = vmatpush.msra.mxu2 %v805_v57  ;;  %952 = vmatpush.msra.mxu3 %v821_v58  ;;  %v887_v56 = vld [vmem:[%s2057_s9 + $0x360] sm:$0xff]  ;;  %v900_v57 = vld [vmem:[%s2057_s9 + $0x3c8] sm:$0xff] }
 0x2d8   : > { %913 = vmatpush.msra.mxu1 %v788_v59  ;;  %973 = vmatpush.msrb.mxu0 %v836_v60  ;;  %v851_v58 = vld [vmem:[%s2057_s9 + $0x240] sm:$0xff]  ;;  %v870_v59 = vld [vmem:[%s2057_s9 + $0x2d8] sm:$0xff] }
 0x2d9   : > { %933 = vmatpush.msra.mxu2 %v804_v61  ;;  %953 = vmatpush.msra.mxu3 %v820_v62  ;;  %v886_v60 = vld [vmem:[%s2057_s9 + $0x358] sm:$0xff]  ;;  %v899_v61 = vld [vmem:[%s2057_s9 + $0x3c0] sm:$0xff] }
 0x2da   : > { %914 = vmatpush.msra.mxu1 %v787_v63  ;;  %974 = vmatpush.msrb.mxu0 %v835_v0  ;;  %v850_v62 = vld [vmem:[%s2057_s9 + $0x238] sm:$0xff]  ;;  %v869_v63 = vld [vmem:[%s2057_s9 + $0x2d0] sm:$0xff] }
 0x2db   : > { %934 = vmatpush.msra.mxu2 %v803_v1  ;;  %954 = vmatpush.msra.mxu3 %v819_v2  ;;  %v885_v0 = vld [vmem:[%s2057_s9 + $0x350] sm:$0xff]  ;;  %v898_v1 = vld [vmem:[%s2057_s9 + $0x3b8] sm:$0xff] }
 0x2dc   : > { %915 = vmatpush.msra.mxu1 %v786_v3  ;;  %975 = vmatpush.msrb.mxu0 %v834_v4  ;;  %v849_v2 = vld [vmem:[%s2057_s9 + $0x230] sm:$0xff]  ;;  %v868_v3 = vld [vmem:[%s2057_s9 + $0x2c8] sm:$0xff] }
 0x2dd   : > { %935 = vmatpush.msra.mxu2 %v802_v5  ;;  %955 = vmatpush.msra.mxu3 %v818_v6  ;;  %v884_v4 = vld [vmem:[%s2057_s9 + $0x348] sm:$0xff]  ;;  %v897_v5 = vld [vmem:[%s2057_s9 + $0x3b0] sm:$0xff] }
 0x2de   : > { %916 = vmatpush.msra.mxu1 %v785_v7  ;;  %976 = vmatpush.msrb.mxu0 %v833_v8  ;;  %v848_v6 = vld [vmem:[%s2057_s9 + $0x228] sm:$0xff]  ;;  %v867_v7 = vld [vmem:[%s2057_s9 + $0x2c0] sm:$0xff] }
 0x2df   : > { %936 = vmatpush.msra.mxu2 %v801_v9  ;;  %956 = vmatpush.msra.mxu3 %v817_v10  ;;  %v883_v8 = vld [vmem:[%s2057_s9 + $0x340] sm:$0xff]  ;;  %v896_v9 = vld [vmem:[%s2057_s9 + $0x3a8] sm:$0xff] }
 0x2e0   : > { %917 = vmatpush.msra.mxu1 %v784_v11  ;;  %977 = vmatpush.msrb.mxu0 %v832_v12  ;;  %v847_v10 = vld [vmem:[%s2057_s9 + $0x220] sm:$0xff]  ;;  %v866_v11 = vld [vmem:[%s2057_s9 + $0x2b8] sm:$0xff] }
 0x2e1   : > { %937 = vmatpush.msra.mxu2 %v800_v13  ;;  %957 = vmatpush.msra.mxu3 %v816_v14  ;;  %v882_v12 = vld [vmem:[%s2057_s9 + $0x338] sm:$0xff]  ;;  %v895_v13 = vld [vmem:[%s2057_s9 + $0x3a0] sm:$0xff] }
 0x2e2   : > { %918 = vmatpush.msra.mxu1 %v783_v15  ;;  %978 = vmatpush.msrb.mxu0 %v831_v16  ;;  %v846_v14 = vld [vmem:[%s2057_s9 + $0x218] sm:$0xff]  ;;  %v865_v15 = vld [vmem:[%s2057_s9 + $0x2b0] sm:$0xff] }
 0x2e3   : > { %938 = vmatpush.msra.mxu2 %v799_v17  ;;  %958 = vmatpush.msra.mxu3 %v815_v18  ;;  %v881_v16 = vld [vmem:[%s2057_s9 + $0x330] sm:$0xff]  ;;  %v1902_v17 = vld [vmem:[%s2056_s8] sm:$0xff]  ;;  %v894_v18 = vld [vmem:[%s2057_s9 + $0x398] sm:$0xff] }
 0x2e4   : > { %919 = vmatpush.msra.mxu1 %v782_v19  ;;  %979 = vmatpush.msrb.mxu0 %v830_v20  ;;  %v845_v19 = vld [vmem:[%s2057_s9 + $0x210] sm:$0xff]  ;;  %v864_v20 = vld [vmem:[%s2057_s9 + $0x2a8] sm:$0xff] }
 0x2e5   : > { %939 = vmatpush.msra.mxu2 %v798_v26  ;;  %959 = vmatpush.msra.mxu3 %v814_v27  ;;  %v879_v26 = vld [vmem:[%s2057_s9 + $0x320] sm:$0xff]  ;;  %v892_v27 = vld [vmem:[%s2057_s9 + $0x388] sm:$0xff] }
 0x2e6   : > { %920 = vmatpush.msra.mxu1 %v781_v21  ;;  %980 = vmatpush.msrb.mxu0 %v829_v22  ;;  %v880_v21 = vld [vmem:[%s2057_s9 + $0x328] sm:$0xff]  ;;  %v893_v22 = vld [vmem:[%s2057_s9 + $0x390] sm:$0xff] }
 0x2e7   : > { %940 = vmatpush.msra.mxu2 %v797_v31  ;;  %960 = vmatpush.msra.mxu3 %v813_v32  ;;  %v878_v31 = vld [vmem:[%s2057_s9 + $0x318] sm:$0xff] }
 0x2e8   : > { %921 = vmatpush.msra.mxu1 %v780_v23  ;;  %981 = vmatpush.msrb.mxu0 %v828_v24  ;;  %v844_v23 = vld [vmem:[%s2057_s9 + $0x208] sm:$0xff]  ;;  %v863_v24 = vld [vmem:[%s2057_s9 + $0x2a0] sm:$0xff] }
 0x2e9   : > { %941 = vmatpush.msra.mxu2 %v796_v35  ;;  %961 = vmatpush.msra.mxu3 %v812_v36  ;;  %v861_v36 = vld [vmem:[%s2057_s9 + $0x290] sm:$0xff] }
 0x2ea   : > { %922 = vmatpush.msra.mxu1 %v779_v25  ;;  %982 = vmatpush.msrb.mxu0 %v827_v28  ;;  %v528_v25 = vperm.slane %v1902_v17, 0  ;;  %v531_v28 = vperm.slane %v1902_v17, 3 }
 0x2eb   : > { %942 = vmatpush.msra.mxu2 %v795_v39  ;;  %962 = vmatpush.msra.mxu3 %v811_v41  ;;  %v860_v39 = vld [vmem:[%s2057_s9 + $0x288] sm:$0xff] }
 0x2ec   : > { %987 = vmatpush.msrb.mxu1 %v858_v29  ;;  %1047 = vmatpush.msra.mxu0 %v906_v30  ;;  %v843_v29 = vld [vmem:[%s2057_s9 + $0x200] sm:$0xff]  ;;  %v862_v30 = vld [vmem:[%s2057_s9 + $0x298] sm:$0xff] }
 0x2ed   : > { %1007 = vmatpush.msrb.mxu2 %v874_v43  ;;  %1027 = vmatpush.msrb.mxu3 %v890_v44  ;;  %v876_v43 = vld [vmem:[%s2057_s9 + $0x308] sm:$0xff] }
 0x2ee   : > { %988 = vmatpush.msrb.mxu1 %v857_v33  ;;  %1048 = vmatpush.msra.mxu0 %v905_v34  ;;  %v891_v33 = vld [vmem:[%s2057_s9 + $0x380] sm:$0xff] }
 0x2ef   : > { %1008 = vmatpush.msrb.mxu2 %v873_v47  ;;  %1028 = vmatpush.msrb.mxu3 %v889_v48  ;;  %v532_v48 = vperm.slane %v1902_v17, 4 }
 0x2f0   : > { %989 = vmatpush.msrb.mxu1 %v856_v37  ;;  %1049 = vmatpush.msra.mxu0 %v904_v38  ;;  %v877_v37 = vld [vmem:[%s2057_s9 + $0x310] sm:$0xff] }
 0x2f1   : > { %1009 = vmatpush.msrb.mxu2 %v872_v51  ;;  %1029 = vmatpush.msrb.mxu3 %v888_v52  ;;  %v535_v52 = vperm.slane %v1902_v17, 7 }
 0x2f2   : > { %990 = vmatpush.msrb.mxu1 %v855_v42  ;;  %1050 = vmatpush.msra.mxu0 %v903_v45  ;;  %v529_v42 = vperm.slane %v1902_v17, 1  ;;  %v530_v45 = vperm.slane %v1902_v17, 2 }
 0x2f3   : > { %1010 = vmatpush.msrb.mxu2 %v871_v55  ;;  %1030 = vmatpush.msrb.mxu3 %v887_v56 }
 0x2f4   : > { %991 = vmatpush.msrb.mxu1 %v854_v46  ;;  %1051 = vmatpush.msra.mxu0 %v902_v49  ;;  %v859_v46 = vld [vmem:[%s2057_s9 + $0x280] sm:$0xff] }
 0x2f5   : > { %1011 = vmatpush.msrb.mxu2 %v870_v59  ;;  %1031 = vmatpush.msrb.mxu3 %v886_v60  ;;  %v875_v49 = vld [vmem:[%s2057_s9 + $0x300] sm:$0xff] }
 0x2f6   : > { %992 = vmatpush.msrb.mxu1 %v853_v50  ;;  %1052 = vmatpush.msra.mxu0 %v901_v53 }
 0x2f7   : > { %1012 = vmatpush.msrb.mxu2 %v869_v63  ;;  %1032 = vmatpush.msrb.mxu3 %v885_v0 }
 0x2f8   : > { %993 = vmatpush.msrb.mxu1 %v852_v54  ;;  %1053 = vmatpush.msra.mxu0 %v900_v57 }
 0x2f9   : > { %1013 = vmatpush.msrb.mxu2 %v868_v3  ;;  %1033 = vmatpush.msrb.mxu3 %v884_v4 }
 0x2fa   : > { %994 = vmatpush.msrb.mxu1 %v851_v58  ;;  %1054 = vmatpush.msra.mxu0 %v899_v61 }
 0x2fb   : > { %1014 = vmatpush.msrb.mxu2 %v867_v7  ;;  %1034 = vmatpush.msrb.mxu3 %v883_v8 }
 0x2fc   : > { %995 = vmatpush.msrb.mxu1 %v850_v62  ;;  %1055 = vmatpush.msra.mxu0 %v898_v1 }
 0x2fd   : > { %1015 = vmatpush.msrb.mxu2 %v866_v11  ;;  %1035 = vmatpush.msrb.mxu3 %v882_v12 }
 0x2fe   : > { %996 = vmatpush.msrb.mxu1 %v849_v2  ;;  %1056 = vmatpush.msra.mxu0 %v897_v5  ;;  %v533_v5 = vperm.slane %v1902_v17, 5 }
 0x2ff   : > { %1016 = vmatpush.msrb.mxu2 %v865_v15  ;;  %1036 = vmatpush.msrb.mxu3 %v881_v16 }
 0x300   : > { %997 = vmatpush.msrb.mxu1 %v848_v6  ;;  %1057 = vmatpush.msra.mxu0 %v896_v9  ;;  %v534_v9 = vperm.slane %v1902_v17, 6 }
 0x301   : > { %1017 = vmatpush.msrb.mxu2 %v864_v20  ;;  %1037 = vmatpush.msrb.mxu3 %v880_v21 }
 0x302   : > { %998 = vmatpush.msrb.mxu1 %v847_v10  ;;  %1058 = vmatpush.msra.mxu0 %v895_v13 }
 0x303   : > { %1018 = vmatpush.msrb.mxu2 %v863_v24  ;;  %1038 = vmatpush.msrb.mxu3 %v879_v26 }
 0x304   : > { %999 = vmatpush.msrb.mxu1 %v846_v14  ;;  %1059 = vmatpush.msra.mxu0 %v894_v18 }
 0x305   : > { %1019 = vmatpush.msrb.mxu2 %v862_v30  ;;  %1039 = vmatpush.msrb.mxu3 %v878_v31 }
 0x306   : > { %1000 = vmatpush.msrb.mxu1 %v845_v19  ;;  %1060 = vmatpush.msra.mxu0 %v893_v22 }
 0x307   : > { %1020 = vmatpush.msrb.mxu2 %v861_v36  ;;  %1040 = vmatpush.msrb.mxu3 %v877_v37 }
 0x308   : > { %1001 = vmatpush.msrb.mxu1 %v844_v23  ;;  %1061 = vmatpush.msra.mxu0 %v892_v27 }
 0x309   : > { %1021 = vmatpush.msrb.mxu2 %v860_v39  ;;  %1041 = vmatpush.msrb.mxu3 %v876_v43 }
 0x30a   : > { %1002 = vmatpush.msrb.mxu1 %v843_v29  ;;  %1062 = vmatpush.msra.mxu0 %v891_v33 }
 0x30b   : > { %1022 = vmatpush.msrb.mxu2 %v859_v46  ;;  %1042 = vmatpush.msrb.mxu3 %v875_v49 }
 0x345   : > { %v564_v32 = vpop.f32.mrf.mxu1 }
 0x346   : > { %v1945_v34 = vadd.f32 %v564_v32, %v528_v25  ;;  %v624_v35 = vpop.f32.mrf.mxu0 }
 0x347   : > { %v1953_v38 = vadd.f32 %v624_v35, %v531_v28 }
 0x348   : > { %v715_v41 = vmul.f32 %v1945_v34, %v1945_v34  ;;  %v707_v29 = vmul.f32 0.5, %v1945_v34 }
 0x349   : > { %v718_v44 = vmul.f32 %v1953_v38, %v1953_v38  ;;  %v710_v37 = vmul.f32 0.5, %v1953_v38 }
 0x34a   : > { %v723_v47 = vmul.f32 %v715_v41, %v1945_v34 }
 0x34b   : > { %v726_v50 = vmul.f32 %v718_v44, %v1953_v38  ;;  %v584_v51 = vpop.f32.mrf.mxu2 }
 0x34c   : > { %v731_v53 = vmul.f32 0.044715, %v723_v47  ;;  %v1977_v54 = vadd.f32 %v584_v51, %v529_v42  ;;  %v604_v55 = vpop.f32.mrf.mxu3 }
 0x34d   : > { %v734_v56 = vmul.f32 0.044715, %v726_v50  ;;  %v1979_v57 = vadd.f32 %v604_v55, %v530_v45  ;;  %v644_v58 = vpop.f32.mrf.mxu1 }
 0x34e   : > { %v739_v59 = vadd.f32 %v731_v53, %v1945_v34  ;;  %v716_v60 = vmul.f32 %v1977_v54, %v1977_v54  ;;  %v1984_v61 = vadd.f32 %v644_v58, %v532_v48  ;;  %v704_v62 = vpop.f32.mrf.mxu0  ;;  %v708_v49 = vmul.f32 0.5, %v1977_v54 }
 0x34f   : > { %v742_v63 = vadd.f32 %v734_v56, %v1953_v38  ;;  %v717_v0 = vmul.f32 %v1979_v57, %v1979_v57  ;;  %v1989_v1 = vadd.f32 %v704_v62, %v535_v52  ;;  %v709_v38 = vmul.f32 0.5, %v1979_v57 }
 0x350   : > { %v747_v2 = vmul.f32 0.7978846, %v739_v59  ;;  %v724_v3 = vmul.f32 %v716_v60, %v1977_v54  ;;  %v719_v4 = vmul.f32 %v1984_v61, %v1984_v61  ;;  %v711_v56 = vmul.f32 0.5, %v1984_v61 }
 0x351   : > { %v750_v6 = vmul.f32 0.7978846, %v742_v63  ;;  %v725_v7 = vmul.f32 %v717_v0, %v1979_v57  ;;  %v722_v8 = vmul.f32 %v1989_v1, %v1989_v1  ;;  %v714_v60 = vmul.f32 0.5, %v1989_v1 }
 0x352   : > { %1224 = vtanh.f32 %v747_v2  ;;  %v732_v10 = vmul.f32 0.044715, %v724_v3  ;;  %v727_v11 = vmul.f32 %v719_v4, %v1984_v61 }
 0x353   : > { %1226 = vtanh.f32 %v750_v6  ;;  %v733_v12 = vmul.f32 0.044715, %v725_v7  ;;  %v730_v13 = vmul.f32 %v722_v8, %v1989_v1  ;;  %v664_v14 = vpop.f32.mrf.mxu2 }
 0x354   : > { %v740_v15 = vadd.f32 %v732_v10, %v1977_v54  ;;  %v735_v16 = vmul.f32 0.044715, %v727_v11  ;;  %v665_v18 = vadd.f32 %v664_v14, %v533_v5  ;;  %v684_v19 = vpop.f32.mrf.mxu3 }
 0x355   : > { %v741_v20 = vadd.f32 %v733_v12, %v1979_v57  ;;  %v738_v21 = vmul.f32 0.044715, %v730_v13  ;;  %v685_v22 = vadd.f32 %v684_v19, %v534_v9 }
 0x356   : > { %v748_v23 = vmul.f32 0.7978846, %v740_v15  ;;  %v743_v17 = vadd.f32 %v735_v16, %v1984_v61  ;;  %v720_v24 = vmul.f32 %v665_v18, %v665_v18  ;;  %v712_v3 = vmul.f32 0.5, %v665_v18 }
 0x357   : > { %v749_v25 = vmul.f32 0.7978846, %v741_v20  ;;  %v746_v26 = vadd.f32 %v738_v21, %v1989_v1  ;;  %v721_v27 = vmul.f32 %v685_v22, %v685_v22  ;;  %v713_v5 = vmul.f32 0.5, %v685_v22 }
 0x358   : > { %v1225_v28 = vpop.eup %1224  ;;  %1228 = vtanh.f32 %v748_v23  ;;  %v751_v30 = vmul.f32 0.7978846, %v743_v17  ;;  %v728_v31 = vmul.f32 %v720_v24, %v665_v18  ;;  %v1213_v23 = vld [vmem:[%s2058_s10] ss:$0 sm:$0xff] }
 0x359   : > { %v1227_v32 = vpop.eup %1226  ;;  %1230 = vtanh.f32 %v749_v25  ;;  %v754_v33 = vmul.f32 0.7978846, %v746_v26  ;;  %v729_v35 = vmul.f32 %v721_v27, %v685_v22  ;;  %v763_v36 = vadd.f32 1.0, %v1225_v28 }
 0x35a   : > { %1232 = vtanh.f32 %v751_v30  ;;  %v736_v39 = vmul.f32 0.044715, %v728_v31  ;;  %v766_v41 = vadd.f32 1.0, %v1227_v32 }
 0x35b   : > { %1234 = vtanh.f32 %v754_v33  ;;  %v737_v42 = vmul.f32 0.044715, %v729_v35  ;;  %v771_v43 = vmul.f32 %v763_v36, %v707_v29 }
 0x35c   : > { %v744_v44 = vadd.f32 %v736_v39, %v665_v18  ;;  %v774_v45 = vmul.f32 %v766_v41, %v710_v37 }
 0x35d   : > { %v745_v46 = vadd.f32 %v737_v42, %v685_v22  ;;  %923 = vmatmul.f32.vlgmr.msra.gmra.mxu1 %v771_v43 }
 0x35e   : > { %v1229_v34 = vpop.eup %1228  ;;  %v752_v47 = vmul.f32 0.7978846, %v744_v44  ;;  %983 = vmatmul.f32.vlgmr.msrb.gmra.mxu0 %v774_v45 }
 0x35f   : > { %v1231_v48 = vpop.eup %1230  ;;  %v753_v50 = vmul.f32 0.7978846, %v745_v46  ;;  %v764_v51 = vadd.f32 1.0, %v1229_v34 }
 0x360   : > { %v1233_v52 = vpop.eup %1232  ;;  %1236 = vtanh.f32 %v752_v47  ;;  %v765_v53 = vadd.f32 1.0, %v1231_v48 }
 0x361   : > { %v1235_v55 = vpop.eup %1234  ;;  %1238 = vtanh.f32 %v753_v50  ;;  %v772_v58 = vmul.f32 %v764_v51, %v708_v49  ;;  %v767_v59 = vadd.f32 1.0, %v1233_v52 }
 0x362   : > { %v773_v62 = vmul.f32 %v765_v53, %v709_v38  ;;  %v770_v63 = vadd.f32 1.0, %v1235_v55 }
 0x363   : > { %943 = vmatmul.f32.vlgmr.msra.gmra.mxu2 %v772_v58  ;;  %v775_v0 = vmul.f32 %v767_v59, %v711_v56 }
 0x364   : > { %963 = vmatmul.f32.vlgmr.msra.gmra.mxu3 %v773_v62  ;;  %v778_v54 = vmul.f32 %v770_v63, %v714_v60 }
 0x365   : > { %1003 = vmatmul.f32.vlgmr.msrb.gmra.mxu1 %v775_v0 }
 0x366   : > { %v1237_v2 = vpop.eup %1236  ;;  %1063 = vmatmul.f32.vlgmr.msra.gmra.mxu0 %v778_v54 }
 0x367   : > { %v1239_v57 = vpop.eup %1238  ;;  %v768_v4 = vadd.f32 1.0, %v1237_v2 }
 0x368   : > { %v769_v61 = vadd.f32 1.0, %v1239_v57 }
 0x369   : > { %v776_v6 = vmul.f32 %v768_v4, %v712_v3 }
 0x36a   : > { %v777_v7 = vmul.f32 %v769_v61, %v713_v5 }
 0x36b   : > { %1023 = vmatmul.f32.vlgmr.msrb.gmra.mxu2 %v776_v6 }
 0x36c   : > { %1043 = vmatmul.f32.vlgmr.msrb.gmra.mxu3 %v777_v7 }
 0x3da   : > { %v924_v1 = vpop.f32.mrf.mxu1 }
 0x3db   : > { %v984_v11 = vpop.f32.mrf.mxu0 }
 0x3e2   : > { %v1004_v14 = vpop.f32.mrf.mxu1 }
 0x3e3   : > { %v1064_v21 = vpop.f32.mrf.mxu0 }
 0x3e6   : > { %v944_v8 = vpop.f32.mrf.mxu2 }
 0x3e7   : > { %v945_v9 = vadd.f32 %v944_v8, %v924_v1  ;;  %v964_v10 = vpop.f32.mrf.mxu3 }
 0x3e9   : > { %v965_v12 = vadd.f32 %v964_v10, %v945_v9 }
 0x3eb   : > { %v985_v13 = vadd.f32 %v984_v11, %v965_v12 }
 0x3ed   : > { %v1005_v15 = vadd.f32 %v1004_v14, %v985_v13 }
 0x3ee   : > { %v1024_v16 = vpop.f32.mrf.mxu2 }
 0x3ef   : > { %v1025_v18 = vadd.f32 %v1024_v16, %v1005_v15  ;;  %v1044_v19 = vpop.f32.mrf.mxu3 }
 0x3f1   : > { %v1045_v20 = vadd.f32 %v1044_v19, %v1025_v18 }
 0x3f3   : > { %v1065_v22 = vadd.f32 %v1064_v21, %v1045_v20 }
 0x3f5   : > { %v1067_v17 = vadd.f32 %v1065_v22, %v1442_v40 }
 0x3f7   : > { %v1072_v24 = vadd.f32 %v1213_v23, %v1067_v17 }
 0x3f9   : > { %1073 = vst.msk [vmem:[%s377_s13] sm:$0xff] %vm385_vm0, %v1072_v24 }
 0x3fa   : > { %1267 = shalt.err (!%p1264_p3)
}
 0x3fb   : > { %1168 = dma.vmem_to_hbm [thread:$0]  (%p1403_p5), %s1088_s14, 128, %s1090_s0, %s1075_s21  }
 0x3fc PF: > { %p1174_p4 = scmp.ge.s32.totalorder %s1302_s20, 2  ;;  %s1101_s15 = sand.u32 1, %s1290_s17  }
 0x3fd   : > { %s1102_s13 = scalar_lea.sflag [#allocation3], %s1101_s15 }
 0x3fe   : > { %p1171_p7 = pnand %p1174_p4, %p1407_p6 }
 0x400   : > { %p1172_p8 = pneg %p1171_p7 }
 0x402   : > { %1285 = dma.done.wait (%p1172_p8), %s1102_s13, 128  }
 0x403   : > { %1287 = vsyncadd (%p1172_p8), %s1102_s13, 4294967168  ;;  %p21_p9 = scmp.ge.s32.totalorder %s1390_s23, 4   ;;  %s2064_s17 = smov %s1294_s18 }
 0x404   : > { %s2065_s18 = smov %s1298_s19  ;;  %s2066_s19 = smov %s1401_s26 }
 0x405   : > { %s2067_s20 = smov %s1390_s23  ;;  %23 = sbr.rel (!%p21_p9) target bundleno = 5 (0x5), region = 99 }
 0x40a   :  { %1108 = vsyncpa [#allocation3], 1 }
 0x40b   :  { %1110 = vsyncpa [#allocation3 + $0x1], 1 }

// kernel: tpu_custom_call.1
= control target key start
LH: loop header
LB: loop body
LE: loop exit
PB: predicated region body
PF: predicated region fallthrough
CT: control target
= control target key end

     0   :  { %s2048_s0 = inlined_call_operand.vmem [shape: f32[16,32], index: 0, kind: input, shape index: {}]   ;;  %s2049_s1 = inlined_call_operand.vmem [shape: f32[1,32], index: 1, kind: input, shape index: {}]   ;;  %s2050_s2 = inlined_call_operand.vmem [shape: f32[1,32], index: 2, kind: input, shape index: {}]   ;;  %s2051_s3 = inlined_call_operand.vmem [shape: f32[32,32], index: 3, kind: input, shape index: {}]   ;;  %s2052_s4 = inlined_call_operand.vmem [shape: f32[1,32], index: 4, kind: input, shape index: {}]   ;;  %s2053_s5 = inlined_call_operand.vmem [shape: f32[1,32], index: 5, kind: input, shape index: {}]   ;;  %s2054_s6 = inlined_call_operand.vmem [shape: f32[1,32], index: 6, kind: input, shape index: {}]   ;;  %s2055_s7 = inlined_call_operand.vmem [shape: f32[32,1024], index: 7, kind: input, shape index: {}]   ;;  %s2056_s8 = inlined_call_operand.vmem [shape: f32[1,1024], index: 8, kind: input, shape index: {}]   ;;  %s2057_s9 = inlined_call_operand.vmem [shape: f32[1024,32], index: 9, kind: input, shape index: {}]   ;;  %s2058_s10 = inlined_call_operand.vmem [shape: f32[1,32], index: 10, kind: input, shape index: {}]   ;;  %s2059_s11 = inlined_call_operand.hbm [shape: f32[16,32], index: 11, kind: output, shape index: {}]  }
   0x1   :  { %2060 = sst [smem:[#allocation5_spill]] %s2048_s0 }
   0x2   :  { %16 = vsyncpa [#allocation3], 0 }
   0x3   :  { %18 = vsyncpa [#allocation3 + $0x1], 0  ;;  %s1365_s17 = smov 0   ;;  %s1367_s18 = smov 0  }
   0x4   :  { %s1369_s19 = smov 0   ;;  %s1371_s20 = smov 0  }
   0x5 LB: > { %s1386_s21 = sadd.s32 4294967295, %s1302_s20   ;;  %s1149_s22 = sadd.s32 4294967294, %s1302_s20   ;;  %s1302_s20 = sphi %s1371_s20, %s2067_s20   ;;  %s1298_s19 = sphi %s1369_s19, %s2066_s19   ;;  %s1294_s18 = sphi %s1367_s18, %s2065_s18   ;;  %s1290_s17 = sphi %s1365_s17, %s2064_s17  }
   0x6   : > { %s1390_s23 = sadd.s32 1, %s1302_s20   ;;  %s267_s24 = sadd.s32 1, %s1298_s19 }
   0x7   : > { %s264_s25 = ssub.s32 %s1302_s20, %s1390_s23  ;;  %p277_p0 = scmp.ne.s32.totalorder %s1298_s19, %s1294_s18 }
   0x8   : > { %p265_p1 = scmp.eq.s32.totalorder %s264_s25, 0  ;;  %p278_p2 = scmp.eq.s32.totalorder %s1386_s21, 1 }
   0x9   : > { %p283_p3 = scmp.ne.s32.totalorder %s1294_s18, %s1290_s17  ;;  %p284_p4 = scmp.eq.s32.totalorder %s1149_s22, 1 }
   0xa   : > { %s1401_s26 = scalar_select %p265_p1, %s1298_s19, %s267_s24  }
   0xb   : > { %p1403_p5 = por %p278_p2, %p277_p0  ;;  %p1407_p6 = por %p284_p4, %p283_p3 }
   0xc   : > { %p1152_p7 = scmp.ge.s32.totalorder %s1302_s20, 1  ;;  %p339_p8 = scmp.lt.s32.totalorder %s1302_s20, 3 }
   0xe   : > { %p340_p9 = pnand %p1152_p7, %p339_p8 }
   0xf   : > { %p378_p10 = scmp.lt.s32.totalorder (!%p340_p9), %s1386_s21, 1  ;;  %s2063_s0 = sld [smem:[#allocation5_spill]] (!%p340_p9) }
  0x10   : > { %343 = sbr.rel (%p340_p9) target bundleno = 1020 (0x3fc), region = 64  ;;  %s375_s15 = sand.u32 (!%p340_p9), 1, %s1294_s18  }
  0x11   : > { %s1153_s16 = sshll.u32 (!%p340_p9), %s375_s15, 3  ;;  %s1165_s22 = sshll.u32 (!%p340_p9), %s1386_s21, 3 }
  0x12   : > { %s377_s13 = scalar_lea.vmem (!%p340_p9), [#allocation2], %s1153_s16  ;;  %s1260_s16 = scalar_lea.hbm (!%p340_p9), %s2059_s11, 16 }
  0x15   : > { %s379_s29 = scalar_select %p378_p10, %s1386_s21, 1  ;;  %vm385_vm0 = vcmask 261120   ;;  %v1304_v2 = vmov 32.0   ;;  %v429_v14 = vld [vmem:[%s2051_s3 + $0x18] sm:$0xff]  ;;  %v428_v15 = vld [vmem:[%s2051_s3 + $0x10] sm:$0xff]  ;;  %v427_v16 = vld [vmem:[%s2051_s3 + $0x8] sm:$0xff] }
  0x16   : > { %1214 = vrcp.f32 %v1304_v2  ;;  %445 = vmatpush.msra.mxu0 %v429_v14  ;;  %v426_v17 = vld [vmem:[%s2051_s3] sm:$0xff]  ;;  %v519_v48 = vld [vmem:[%s2055_s7 + $0xc8] sm:$0xff]  ;;  %v520_v49 = vld [vmem:[%s2055_s7 + $0xd0] sm:$0xff]  ;;  %s1075_s21 = scalar_lea.sflag [#allocation3], %s375_s15 }
  0x17   : > { %s1154_s30 = sshll.u32 %s379_s29, 3  ;;  %v1208_v31 = vld [vmem:[%s2049_s1] ss:$0 sm:$0xff]  ;;  %579 = vmatpush.msra.mxu2 %v519_v48  ;;  %v521_v51 = vld [vmem:[%s2055_s7 + $0xd8] sm:$0xff]  ;;  %599 = vmatpush.msra.mxu3 %v520_v49  ;;  %v511_v54 = vld [vmem:[%s2055_s7 + $0x88] sm:$0xff]  ;;  %s1085_s29 = scalar_lea.hbm %s2059_s11, %s1165_s22 }
  0x18   : > { %s381_s14 = scalar_lea.vmem %s2063_s0, %s1154_s30  ;;  %446 = vmatpush.msra.mxu0 %v428_v15  ;;  %v1209_v34 = vld [vmem:[%s2050_s2] ss:$0 sm:$0xff]  ;;  %v512_v55 = vld [vmem:[%s2055_s7 + $0x90] sm:$0xff]  ;;  %v513_v56 = vld [vmem:[%s2055_s7 + $0x98] sm:$0xff]  ;;  %s1089_s0 = sshll.u32 %s1085_s29, 4  ;;  %s1090_s0 = int_to_ptr.hbm [resolvable:$true] %s1089_s0 }
  0x19   : > { %v382_v0 = vld [vmem:[%s381_s14] sm:$0xff]  ;;  %580 = vmatpush.msra.mxu2 %v511_v54  ;;  %v503_v58 = vld [vmem:[%s2055_s7 + $0x48] sm:$0xff]  ;;  %600 = vmatpush.msra.mxu3 %v512_v55  ;;  %v504_v59 = vld [vmem:[%s2055_s7 + $0x50] sm:$0xff]  ;;  %s1087_s14 = sshll.u32 %s377_s13, 4  ;;  %s1254_s24 = sshra.s32 %s1090_s0, 4  ;;  %s1088_s14 = int_to_ptr.vmem [resolvable:$true] %s1087_s14  ;;  %s1255_s24 = int_to_ptr.hbm [resolvable:$true] %s1254_s24 }
  0x1a   : > { %v386_v1 = vsel %vm385_vm0, %v382_v0, 0.0  ;;  %447 = vmatpush.msra.mxu0 %v427_v16  ;;  %v1210_v37 = vld [vmem:[%s2052_s4] ss:$0 sm:$0xff]  ;;  %v505_v60 = vld [vmem:[%s2055_s7 + $0x58] sm:$0xff]  ;;  %v495_v62 = vld [vmem:[%s2055_s7 + $0x8] sm:$0xff]  ;;  %s1256_s22 = scalar_lea.hbm %s1255_s24, 8  ;;  %p1261_p0 = scmp.lt.s32.totalorder %s1255_s24, %s2059_s11 }
  0x1b   : > { %387 = vadd.xlane.f32.xlu0 %v386_v1  ;;  %v518_v47 = vld [vmem:[%s2055_s7 + $0xc0] sm:$0xff]  ;;  %581 = vmatpush.msra.mxu2 %v503_v58  ;;  %v496_v63 = vld [vmem:[%s2055_s7 + $0x10] sm:$0xff]  ;;  %v523_v1 = vld [vmem:[%s2055_s7 + $0xe8] sm:$0xff]  ;;  %p1257_p11 = scmp.ne.s32.totalorder %s1255_s24, %s1256_s22  ;;  %p1262_p1 = scmp.lt.s32.totalorder %s1260_s16, %s1256_s22 }
  0x1c   : > { %v1215_v3 = vpop.eup %1214  ;;  %448 = vmatpush.msra.mxu0 %v426_v17  ;;  %559 = vmatpush.msra.mxu1 %v518_v47  ;;  %v510_v53 = vld [vmem:[%s2055_s7 + $0x80] sm:$0xff]  ;;  %v509_v14 = vld [vmem:[%s2055_s7 + $0x78] sm:$0xff]  ;;  %v499_v16 = vld [vmem:[%s2055_s7 + $0x28] sm:$0xff] }
  0x1d   : > { %v390_v4 = vmul.f32 32.0, %v1215_v3  ;;  %vm394_vm1 = vweird.f32 %v1215_v3  ;;  %v502_v57 = vld [vmem:[%s2055_s7 + $0x40] sm:$0xff]  ;;  %601 = vmatpush.msra.mxu3 %v504_v59  ;;  %582 = vmatpush.msra.mxu2 %v495_v62  ;;  %v822_v54 = vld [vmem:[%s2057_s9 + $0x158] sm:$0xff]  ;;  %v789_v55 = vld [vmem:[%s2057_s9 + $0x50] sm:$0xff]  ;;  %p1258_p12 = pnand %p1257_p11, %p1403_p5  ;;  %p1263_p2 = por %p1262_p1, %p1261_p0 }
  0x1e   : > { %619 = vmatpush.msrb.mxu0 %v521_v51  ;;  %560 = vmatpush.msra.mxu1 %v510_v53  ;;  %v494_v61 = vld [vmem:[%s2055_s7] sm:$0xff]  ;;  %v790_v51 = vld [vmem:[%s2057_s9 + $0x58] sm:$0xff]  ;;  %v821_v58 = vld [vmem:[%s2057_s9 + $0x150] sm:$0xff] }
  0x1f   : > { %v391_v5 = vsub.f32 1.0, %v390_v4  ;;  %602 = vmatpush.msra.mxu3 %v496_v63  ;;  %v522_v2 = vld [vmem:[%s2055_s7 + $0xe0] sm:$0xff]  ;;  %659 = vmatpush.msrb.mxu2 %v523_v1  ;;  %v806_v53 = vld [vmem:[%s2057_s9 + $0xd8] sm:$0xff]  ;;  %v788_v59 = vld [vmem:[%s2057_s9 + $0x48] sm:$0xff]  ;;  %p1259_p13 = pneg %p1258_p12 }
  0x20   : > { %620 = vmatpush.msrb.mxu0 %v513_v56  ;;  %561 = vmatpush.msra.mxu1 %v502_v57  ;;  %v498_v17 = vld [vmem:[%s2055_s7 + $0x20] sm:$0xff]  ;;  %v837_v56 = vld [vmem:[%s2057_s9 + $0x1d0] sm:$0xff]  ;;  %v820_v62 = vld [vmem:[%s2057_s9 + $0x148] sm:$0xff] }
  0x21   : > { %v392_v6 = vmul.f32 %v1215_v3, %v391_v5  ;;  %v525_v5 = vld [vmem:[%s2055_s7 + $0xf8] sm:$0xff]  ;;  %v791_v47 = vld [vmem:[%s2057_s9 + $0x60] sm:$0xff]  ;;  %v805_v57 = vld [vmem:[%s2057_s9 + $0xd0] sm:$0xff]  ;;  %p1264_p3 = pnand %p1263_p2, %p1259_p13 }
  0x22   : > { %621 = vmatpush.msrb.mxu0 %v505_v60  ;;  %562 = vmatpush.msra.mxu1 %v494_v61  ;;  %v839_v48 = vld [vmem:[%s2057_s9 + $0x1e0] sm:$0xff]  ;;  %v836_v60 = vld [vmem:[%s2057_s9 + $0x1c8] sm:$0xff] }
  0x23   : > { %v393_v7 = vadd.f32 %v1215_v3, %v392_v6  ;;  %v515_v6 = vld [vmem:[%s2055_s7 + $0xa8] sm:$0xff]  ;;  %v807_v49 = vld [vmem:[%s2057_s9 + $0xe0] sm:$0xff] }
  0x24   : > { %639 = vmatpush.msrb.mxu1 %v522_v2  ;;  %660 = vmatpush.msrb.mxu2 %v515_v6  ;;  %v804_v61 = vld [vmem:[%s2057_s9 + $0xc8] sm:$0xff]  ;;  %v787_v63 = vld [vmem:[%s2057_s9 + $0x40] sm:$0xff]  ;;  %v818_v6 = vld [vmem:[%s2057_s9 + $0x138] sm:$0xff] }
  0x25   : > { %v395_v8 = vsel %vm394_vm1, %v1215_v3, %v393_v7  ;;  %v524_v3 = vld [vmem:[%s2055_s7 + $0xf0] sm:$0xff]  ;;  %v514_v7 = vld [vmem:[%s2055_s7 + $0xa0] sm:$0xff] }
  0x26   : > { %679 = vmatpush.msrb.mxu3 %v524_v3  ;;  %640 = vmatpush.msrb.mxu1 %v514_v7  ;;  %v803_v1 = vld [vmem:[%s2057_s9 + $0xc0] sm:$0xff]  ;;  %v786_v3 = vld [vmem:[%s2057_s9 + $0x38] sm:$0xff]  ;;  %v785_v7 = vld [vmem:[%s2057_s9 + $0x30] sm:$0xff] }
  0x27   : > { %v819_v2 = vld [vmem:[%s2057_s9 + $0x140] sm:$0xff] }
  0x8e   : > { %v388_v9 = vpop.xlane.xlu0 %387 }
  0x8f   : > { %v396_v10 = vmul.f32 %v395_v8, %v388_v9  ;;  %v516_v9 = vld [vmem:[%s2055_s7 + $0xb0] sm:$0xff] }
  0x90   : > { %680 = vmatpush.msrb.mxu3 %v516_v9  ;;  %v801_v9 = vld [vmem:[%s2057_s9 + $0xb0] sm:$0xff] }
  0x91   : > { %v397_v11 = vsub.f32 %v382_v0, %v396_v10  ;;  %v517_v10 = vld [vmem:[%s2055_s7 + $0xb8] sm:$0xff] }
  0x93   : > { %v398_v12 = vmul.f32 %v397_v11, %v397_v11 }
  0x95   : > { %v399_v13 = vsel %vm385_vm0, %v398_v12, 0.0  ;;  %v506_v12 = vld [vmem:[%s2055_s7 + $0x60] sm:$0xff] }
  0x96   : > { %400 = vadd.xlane.f32.xlu0 %v399_v13  ;;  %v508_v13 = vld [vmem:[%s2055_s7 + $0x70] sm:$0xff]  ;;  %641 = vmatpush.msrb.mxu1 %v506_v12  ;;  %v832_v12 = vld [vmem:[%s2057_s9 + $0x1a8] sm:$0xff] }
  0x97   : > { %681 = vmatpush.msrb.mxu3 %v508_v13  ;;  %v800_v13 = vld [vmem:[%s2057_s9 + $0xa8] sm:$0xff] }
  0x98   : > { %642 = vmatpush.msrb.mxu1 %v498_v17  ;;  %v799_v17 = vld [vmem:[%s2057_s9 + $0xa0] sm:$0xff] }
 0x109   : > { %v401_v18 = vpop.xlane.xlu0 %400 }
 0x10a   : > { %v402_v19 = vmul.f32 0.032258064, %v401_v18  ;;  %v500_v18 = vld [vmem:[%s2055_s7 + $0x30] sm:$0xff] }
 0x10b   : > { %682 = vmatpush.msrb.mxu3 %v500_v18  ;;  %v815_v18 = vld [vmem:[%s2057_s9 + $0x120] sm:$0xff] }
 0x10c   : > { %1216 = vrsqrt.f32 %v402_v19  ;;  %vm410_vm2 = vcmp.eq.f32.partialorder %v402_v19, inf  ;;  %v413_v27 = vand.u32 2147483648, %v402_v19  ;;  %vm412_vm3 = vcmp.eq.f32.partialorder %v402_v19, 0.0 }
 0x112   : > { %v1217_v20 = vpop.eup %1216 }
 0x113   : > { %v404_v21 = vmul.f32 %v1217_v20, %v402_v19 }
 0x115   : > { %v405_v22 = vmul.f32 %v1217_v20, %v404_v21 }
 0x117   : > { %v406_v23 = vmul.f32 0.5, %v405_v22 }
 0x119   : > { %v407_v24 = vsub.f32 1.5, %v406_v23 }
 0x11b   : > { %v408_v25 = vmul.f32 %v1217_v20, %v407_v24 }
 0x11d   : > { %v409_v26 = vmul.f32 %v408_v25, %v402_v19 }
 0x11f   : > { %v411_v28 = vsel %vm410_vm2, %v402_v19, %v409_v26  ;;  %v501_v19 = vld [vmem:[%s2055_s7 + $0x38] sm:$0xff] }
 0x120   : > { %v414_v29 = vsel %vm412_vm3, %v413_v27, %v411_v28  ;;  %v1211_v28 = vld [vmem:[%s2053_s5] ss:$0 sm:$0xff] }
 0x121   : > { %v415_v30 = vadd.f32 1e-06, %v414_v29 }
 0x123   : > { %1218 = vrcp.f32 %v415_v30 }
 0x129   : > { %v1219_v32 = vpop.eup %1218 }
 0x12a   : > { %v417_v33 = vmul.f32 %v1219_v32, %v397_v11  ;;  %v507_v11 = vld [vmem:[%s2055_s7 + $0x68] sm:$0xff] }
 0x12b   : > { %661 = vmatpush.msrb.mxu2 %v507_v11  ;;  %v784_v11 = vld [vmem:[%s2057_s9 + $0x28] sm:$0xff] }
 0x12c   : > { %v421_v35 = vmul.f32 %v1208_v31, %v417_v33  ;;  %v1212_v31 = vld [vmem:[%s2054_s6] ss:$0 sm:$0xff] }
 0x12d   : > { %662 = vmatpush.msrb.mxu2 %v499_v16  ;;  %v831_v16 = vld [vmem:[%s2057_s9 + $0x1a0] sm:$0xff] }
 0x12e   : > { %v425_v36 = vadd.f32 %v1209_v34, %v421_v35  ;;  %v794_v34 = vld [vmem:[%s2057_s9 + $0x78] sm:$0xff] }
 0x12f   : > { %v842_v35 = vld [vmem:[%s2057_s9 + $0x1f8] sm:$0xff] }
 0x130   : > { %1155 = vmatmul.msk.f32.vlgmr.msra.gmra.mxu0 %vm385_vm0, %v425_v36  ;;  %v810_v36 = vld [vmem:[%s2057_s9 + $0xf8] sm:$0xff] }
 0x1ad   : > { %v450_v38 = vpop.f32.mrf.mxu0 }
 0x1ae   : > { %v453_v39 = vadd.f32 %v450_v38, %v382_v0  ;;  %v497_v0 = vld [vmem:[%s2055_s7 + $0x18] sm:$0xff]  ;;  %v793_v38 = vld [vmem:[%s2057_s9 + $0x70] sm:$0xff] }
 0x1af   : > { %622 = vmatpush.msrb.mxu0 %v497_v0  ;;  %v835_v0 = vld [vmem:[%s2057_s9 + $0x1c0] sm:$0xff] }
 0x1b0   : > { %v1442_v40 = vadd.f32 %v1210_v37, %v453_v39  ;;  %v826_v37 = vld [vmem:[%s2057_s9 + $0x178] sm:$0xff]  ;;  %v841_v39 = vld [vmem:[%s2057_s9 + $0x1f0] sm:$0xff] }
 0x1b1   : > { %699 = vmatpush.msra.mxu0 %v525_v5  ;;  %v802_v5 = vld [vmem:[%s2057_s9 + $0xb8] sm:$0xff] }
 0x1b2   : > { %v461_v41 = vsel %vm385_vm0, %v1442_v40, 0.0 }
 0x1b3   : > { %462 = vadd.xlane.f32.xlu1 %v461_v41  ;;  %700 = vmatpush.msra.mxu0 %v517_v10  ;;  %v809_v41 = vld [vmem:[%s2057_s9 + $0xf0] sm:$0xff] }
 0x1b4   : > { %v817_v10 = vld [vmem:[%s2057_s9 + $0x130] sm:$0xff] }
 0x1b5   : > { %701 = vmatpush.msra.mxu0 %v509_v14  ;;  %v816_v14 = vld [vmem:[%s2057_s9 + $0x128] sm:$0xff] }
 0x1b7   : > { %702 = vmatpush.msra.mxu0 %v501_v19  ;;  %v782_v19 = vld [vmem:[%s2057_s9 + $0x18] sm:$0xff] }
 0x226   : > { %v463_v42 = vpop.xlane.xlu1 %462 }
 0x227   : > { %v464_v43 = vmul.f32 %v463_v42, %v395_v8  ;;  %v825_v42 = vld [vmem:[%s2057_s9 + $0x170] sm:$0xff] }
 0x229   : > { %v1447_v44 = vsub.f32 %v1442_v40, %v464_v43  ;;  %v792_v43 = vld [vmem:[%s2057_s9 + $0x68] sm:$0xff] }
 0x22b   : > { %v466_v45 = vmul.f32 %v1447_v44, %v1447_v44 }
 0x22d   : > { %v467_v46 = vsel %vm385_vm0, %v466_v45, 0.0  ;;  %v808_v45 = vld [vmem:[%s2057_s9 + $0xe8] sm:$0xff] }
 0x22e   : > { %468 = vadd.xlane.f32.xlu1 %v467_v46  ;;  %v824_v46 = vld [vmem:[%s2057_s9 + $0x168] sm:$0xff] }
 0x2a1   : > { %v469_v50 = vpop.xlane.xlu1 %468 }
 0x2a2   : > { %v1464_v52 = vmul.f32 0.032258064, %v469_v50  ;;  %v823_v50 = vld [vmem:[%s2057_s9 + $0x160] sm:$0xff] }
 0x2a4   : > { %1220 = vrsqrt.f32 %v1464_v52  ;;  %vm478_vm4 = vcmp.eq.f32.partialorder %v1464_v52, inf  ;;  %v481_v24 = vand.u32 2147483648, %v1464_v52  ;;  %vm480_vm5 = vcmp.eq.f32.partialorder %v1464_v52, 0.0 }
 0x2aa   : > { %v1221_v4 = vpop.eup %1220 }
 0x2ab   : > { %v472_v8 = vmul.f32 %v1221_v4, %v1464_v52 }
 0x2ad   : > { %v473_v15 = vmul.f32 %v1221_v4, %v472_v8  ;;  %v833_v8 = vld [vmem:[%s2057_s9 + $0x1b0] sm:$0xff] }
 0x2af   : > { %v474_v20 = vmul.f32 0.5, %v473_v15  ;;  %v783_v15 = vld [vmem:[%s2057_s9 + $0x20] sm:$0xff] }
 0x2b1   : > { %v475_v21 = vsub.f32 1.5, %v474_v20  ;;  %v830_v20 = vld [vmem:[%s2057_s9 + $0x198] sm:$0xff] }
 0x2b3   : > { %v476_v22 = vmul.f32 %v1221_v4, %v475_v21  ;;  %v834_v4 = vld [vmem:[%s2057_s9 + $0x1b8] sm:$0xff]  ;;  %v781_v21 = vld [vmem:[%s2057_s9 + $0x10] sm:$0xff] }
 0x2b5   : > { %v477_v23 = vmul.f32 %v476_v22, %v1464_v52  ;;  %v829_v22 = vld [vmem:[%s2057_s9 + $0x190] sm:$0xff] }
 0x2b7   : > { %v479_v25 = vsel %vm478_vm4, %v1464_v52, %v477_v23  ;;  %v838_v52 = vld [vmem:[%s2057_s9 + $0x1d8] sm:$0xff]  ;;  %v780_v23 = vld [vmem:[%s2057_s9 + $0x8] sm:$0xff] }
 0x2b8   : > { %v482_v26 = vsel %vm480_vm5, %v481_v24, %v479_v25  ;;  %v828_v24 = vld [vmem:[%s2057_s9 + $0x188] sm:$0xff]  ;;  %v779_v25 = vld [vmem:[%s2057_s9] sm:$0xff] }
 0x2b9   : > { %v483_v27 = vadd.f32 1e-06, %v482_v26  ;;  %v798_v26 = vld [vmem:[%s2057_s9 + $0x98] sm:$0xff] }
 0x2bb   : > { %1222 = vrcp.f32 %v483_v27  ;;  %v814_v27 = vld [vmem:[%s2057_s9 + $0x118] sm:$0xff] }
 0x2c1   : > { %v1223_v29 = vpop.eup %1222 }
 0x2c2   : > { %v485_v30 = vmul.f32 %v1223_v29, %v1447_v44  ;;  %v840_v44 = vld [vmem:[%s2057_s9 + $0x1e8] sm:$0xff]  ;;  %v858_v29 = vld [vmem:[%s2057_s9 + $0x278] sm:$0xff] }
 0x2c4   : > { %v489_v32 = vmul.f32 %v1211_v28, %v485_v30  ;;  %v827_v28 = vld [vmem:[%s2057_s9 + $0x180] sm:$0xff]  ;;  %v906_v30 = vld [vmem:[%s2057_s9 + $0x3f8] sm:$0xff] }
 0x2c6   : > { %v493_v33 = vadd.f32 %v1212_v31, %v489_v32  ;;  %v797_v31 = vld [vmem:[%s2057_s9 + $0x90] sm:$0xff] }
 0x2c7   : > { %v813_v32 = vld [vmem:[%s2057_s9 + $0x110] sm:$0xff] }
 0x2c8   : > { %1156 = vmatmul.msk.f32.vlgmr.msra.gmra.mxu1 %vm385_vm0, %v493_v33  ;;  %1157 = vmatmul.msk.f32.vlgmr.msra.gmra.mxu2 %vm385_vm0, %v493_v33 }
 0x2c9   : > { %1158 = vmatmul.msk.f32.vlgmr.msra.gmra.mxu3 %vm385_vm0, %v493_v33  ;;  %1159 = vmatmul.msk.f32.vlgmr.msrb.gmra.mxu0 %vm385_vm0, %v493_v33 }
 0x2ca   : > { %907 = vmatpush.msra.mxu1 %v794_v34  ;;  %967 = vmatpush.msrb.mxu0 %v842_v35  ;;  %v905_v34 = vld [vmem:[%s2057_s9 + $0x3f0] sm:$0xff]  ;;  %v796_v35 = vld [vmem:[%s2057_s9 + $0x88] sm:$0xff] }
 0x2cb   : > { %927 = vmatpush.msra.mxu2 %v810_v36  ;;  %947 = vmatpush.msra.mxu3 %v826_v37  ;;  %v812_v36 = vld [vmem:[%s2057_s9 + $0x108] sm:$0xff] }
 0x2cc   : > { %908 = vmatpush.msra.mxu1 %v793_v38  ;;  %968 = vmatpush.msrb.mxu0 %v841_v39  ;;  %v856_v37 = vld [vmem:[%s2057_s9 + $0x268] sm:$0xff]  ;;  %v795_v39 = vld [vmem:[%s2057_s9 + $0x80] sm:$0xff] }
 0x2cd   : > { %928 = vmatpush.msra.mxu2 %v809_v41  ;;  %948 = vmatpush.msra.mxu3 %v825_v42  ;;  %v904_v38 = vld [vmem:[%s2057_s9 + $0x3e8] sm:$0xff]  ;;  %v811_v41 = vld [vmem:[%s2057_s9 + $0x100] sm:$0xff] }
 0x2ce   : > { %909 = vmatpush.msra.mxu1 %v792_v43  ;;  %969 = vmatpush.msrb.mxu0 %v840_v44  ;;  %v855_v42 = vld [vmem:[%s2057_s9 + $0x260] sm:$0xff]  ;;  %v874_v43 = vld [vmem:[%s2057_s9 + $0x2f8] sm:$0xff] }
 0x2cf   : > { %929 = vmatpush.msra.mxu2 %v808_v45  ;;  %949 = vmatpush.msra.mxu3 %v824_v46  ;;  %v890_v44 = vld [vmem:[%s2057_s9 + $0x378] sm:$0xff]  ;;  %v903_v45 = vld [vmem:[%s2057_s9 + $0x3e0] sm:$0xff] }
 0x2d0   : > { %1160 = vmatmul.msk.f32.vlgmr.msrb.gmra.mxu1 %vm385_vm0, %v493_v33  ;;  %1161 = vmatmul.msk.f32.vlgmr.msrb.gmra.mxu2 %vm385_vm0, %v493_v33  ;;  %v854_v46 = vld [vmem:[%s2057_s9 + $0x258] sm:$0xff] }
 0x2d1   : > { %1162 = vmatmul.msk.f32.vlgmr.msrb.gmra.mxu3 %vm385_vm0, %v493_v33  ;;  %1163 = vmatmul.msk.f32.vlgmr.msra.gmra.mxu0 %vm385_vm0, %v493_v33  ;;  %v857_v33 = vld [vmem:[%s2057_s9 + $0x270] sm:$0xff] }
 0x2d2   : > { %910 = vmatpush.msra.mxu1 %v791_v47  ;;  %970 = vmatpush.msrb.mxu0 %v839_v48  ;;  %v873_v47 = vld [vmem:[%s2057_s9 + $0x2f0] sm:$0xff] }
 0x2d3   : > { %930 = vmatpush.msra.mxu2 %v807_v49  ;;  %950 = vmatpush.msra.mxu3 %v823_v50  ;;  %v889_v48 = vld [vmem:[%s2057_s9 + $0x370] sm:$0xff]  ;;  %v902_v49 = vld [vmem:[%s2057_s9 + $0x3d8] sm:$0xff] }
 0x2d4   : > { %911 = vmatpush.msra.mxu1 %v790_v51  ;;  %971 = vmatpush.msrb.mxu0 %v838_v52  ;;  %v853_v50 = vld [vmem:[%s2057_s9 + $0x250] sm:$0xff]  ;;  %v872_v51 = vld [vmem:[%s2057_s9 + $0x2e8] sm:$0xff] }
 0x2d5   : > { %931 = vmatpush.msra.mxu2 %v806_v53  ;;  %951 = vmatpush.msra.mxu3 %v822_v54  ;;  %v888_v52 = vld [vmem:[%s2057_s9 + $0x368] sm:$0xff]  ;;  %v901_v53 = vld [vmem:[%s2057_s9 + $0x3d0] sm:$0xff] }
 0x2d6   : > { %912 = vmatpush.msra.mxu1 %v789_v55  ;;  %972 = vmatpush.msrb.mxu0 %v837_v56  ;;  %v852_v54 = vld [vmem:[%s2057_s9 + $0x248] sm:$0xff]  ;;  %v871_v55 = vld [vmem:[%s2057_s9 + $0x2e0] sm:$0xff] }
 0x2d7   : > { %932 = vmatpush.msra.mxu2 %v805_v57  ;;  %952 = vmatpush.msra.mxu3 %v821_v58  ;;  %v887_v56 = vld [vmem:[%s2057_s9 + $0x360] sm:$0xff]  ;;  %v900_v57 = vld [vmem:[%s2057_s9 + $0x3c8] sm:$0xff] }
 0x2d8   : > { %913 = vmatpush.msra.mxu1 %v788_v59  ;;  %973 = vmatpush.msrb.mxu0 %v836_v60  ;;  %v851_v58 = vld [vmem:[%s2057_s9 + $0x240] sm:$0xff]  ;;  %v870_v59 = vld [vmem:[%s2057_s9 + $0x2d8] sm:$0xff] }
 0x2d9   : > { %933 = vmatpush.msra.mxu2 %v804_v61  ;;  %953 = vmatpush.msra.mxu3 %v820_v62  ;;  %v886_v60 = vld [vmem:[%s2057_s9 + $0x358] sm:$0xff]  ;;  %v899_v61 = vld [vmem:[%s2057_s9 + $0x3c0] sm:$0xff] }
 0x2da   : > { %914 = vmatpush.msra.mxu1 %v787_v63  ;;  %974 = vmatpush.msrb.mxu0 %v835_v0  ;;  %v850_v62 = vld [vmem:[%s2057_s9 + $0x238] sm:$0xff]  ;;  %v869_v63 = vld [vmem:[%s2057_s9 + $0x2d0] sm:$0xff] }
 0x2db   : > { %934 = vmatpush.msra.mxu2 %v803_v1  ;;  %954 = vmatpush.msra.mxu3 %v819_v2  ;;  %v885_v0 = vld [vmem:[%s2057_s9 + $0x350] sm:$0xff]  ;;  %v898_v1 = vld [vmem:[%s2057_s9 + $0x3b8] sm:$0xff] }
 0x2dc   : > { %915 = vmatpush.msra.mxu1 %v786_v3  ;;  %975 = vmatpush.msrb.mxu0 %v834_v4  ;;  %v849_v2 = vld [vmem:[%s2057_s9 + $0x230] sm:$0xff]  ;;  %v868_v3 = vld [vmem:[%s2057_s9 + $0x2c8] sm:$0xff] }
 0x2dd   : > { %935 = vmatpush.msra.mxu2 %v802_v5  ;;  %955 = vmatpush.msra.mxu3 %v818_v6  ;;  %v884_v4 = vld [vmem:[%s2057_s9 + $0x348] sm:$0xff]  ;;  %v897_v5 = vld [vmem:[%s2057_s9 + $0x3b0] sm:$0xff] }
 0x2de   : > { %916 = vmatpush.msra.mxu1 %v785_v7  ;;  %976 = vmatpush.msrb.mxu0 %v833_v8  ;;  %v848_v6 = vld [vmem:[%s2057_s9 + $0x228] sm:$0xff]  ;;  %v867_v7 = vld [vmem:[%s2057_s9 + $0x2c0] sm:$0xff] }
 0x2df   : > { %936 = vmatpush.msra.mxu2 %v801_v9  ;;  %956 = vmatpush.msra.mxu3 %v817_v10  ;;  %v883_v8 = vld [vmem:[%s2057_s9 + $0x340] sm:$0xff]  ;;  %v896_v9 = vld [vmem:[%s2057_s9 + $0x3a8] sm:$0xff] }
 0x2e0   : > { %917 = vmatpush.msra.mxu1 %v784_v11  ;;  %977 = vmatpush.msrb.mxu0 %v832_v12  ;;  %v847_v10 = vld [vmem:[%s2057_s9 + $0x220] sm:$0xff]  ;;  %v866_v11 = vld [vmem:[%s2057_s9 + $0x2b8] sm:$0xff] }
 0x2e1   : > { %937 = vmatpush.msra.mxu2 %v800_v13  ;;  %957 = vmatpush.msra.mxu3 %v816_v14  ;;  %v882_v12 = vld [vmem:[%s2057_s9 + $0x338] sm:$0xff]  ;;  %v895_v13 = vld [vmem:[%s2057_s9 + $0x3a0] sm:$0xff] }
 0x2e2   : > { %918 = vmatpush.msra.mxu1 %v783_v15  ;;  %978 = vmatpush.msrb.mxu0 %v831_v16  ;;  %v846_v14 = vld [vmem:[%s2057_s9 + $0x218] sm:$0xff]  ;;  %v865_v15 = vld [vmem:[%s2057_s9 + $0x2b0] sm:$0xff] }
 0x2e3   : > { %938 = vmatpush.msra.mxu2 %v799_v17  ;;  %958 = vmatpush.msra.mxu3 %v815_v18  ;;  %v881_v16 = vld [vmem:[%s2057_s9 + $0x330] sm:$0xff]  ;;  %v1902_v17 = vld [vmem:[%s2056_s8] sm:$0xff]  ;;  %v894_v18 = vld [vmem:[%s2057_s9 + $0x398] sm:$0xff] }
 0x2e4   : > { %919 = vmatpush.msra.mxu1 %v782_v19  ;;  %979 = vmatpush.msrb.mxu0 %v830_v20  ;;  %v845_v19 = vld [vmem:[%s2057_s9 + $0x210] sm:$0xff]  ;;  %v864_v20 = vld [vmem:[%s2057_s9 + $0x2a8] sm:$0xff] }
 0x2e5   : > { %939 = vmatpush.msra.mxu2 %v798_v26  ;;  %959 = vmatpush.msra.mxu3 %v814_v27  ;;  %v879_v26 = vld [vmem:[%s2057_s9 + $0x320] sm:$0xff]  ;;  %v892_v27 = vld [vmem:[%s2057_s9 + $0x388] sm:$0xff] }
 0x2e6   : > { %920 = vmatpush.msra.mxu1 %v781_v21  ;;  %980 = vmatpush.msrb.mxu0 %v829_v22  ;;  %v880_v21 = vld [vmem:[%s2057_s9 + $0x328] sm:$0xff]  ;;  %v893_v22 = vld [vmem:[%s2057_s9 + $0x390] sm:$0xff] }
 0x2e7   : > { %940 = vmatpush.msra.mxu2 %v797_v31  ;;  %960 = vmatpush.msra.mxu3 %v813_v32  ;;  %v878_v31 = vld [vmem:[%s2057_s9 + $0x318] sm:$0xff] }
 0x2e8   : > { %921 = vmatpush.msra.mxu1 %v780_v23  ;;  %981 = vmatpush.msrb.mxu0 %v828_v24  ;;  %v844_v23 = vld [vmem:[%s2057_s9 + $0x208] sm:$0xff]  ;;  %v863_v24 = vld [vmem:[%s2057_s9 + $0x2a0] sm:$0xff] }
 0x2e9   : > { %941 = vmatpush.msra.mxu2 %v796_v35  ;;  %961 = vmatpush.msra.mxu3 %v812_v36  ;;  %v861_v36 = vld [vmem:[%s2057_s9 + $0x290] sm:$0xff] }
 0x2ea   : > { %922 = vmatpush.msra.mxu1 %v779_v25  ;;  %982 = vmatpush.msrb.mxu0 %v827_v28  ;;  %v528_v25 = vperm.slane %v1902_v17, 0  ;;  %v531_v28 = vperm.slane %v1902_v17, 3 }
 0x2eb   : > { %942 = vmatpush.msra.mxu2 %v795_v39  ;;  %962 = vmatpush.msra.mxu3 %v811_v41  ;;  %v860_v39 = vld [vmem:[%s2057_s9 + $0x288] sm:$0xff] }
 0x2ec   : > { %987 = vmatpush.msrb.mxu1 %v858_v29  ;;  %1047 = vmatpush.msra.mxu0 %v906_v30  ;;  %v843_v29 = vld [vmem:[%s2057_s9 + $0x200] sm:$0xff]  ;;  %v862_v30 = vld [vmem:[%s2057_s9 + $0x298] sm:$0xff] }
 0x2ed   : > { %1007 = vmatpush.msrb.mxu2 %v874_v43  ;;  %1027 = vmatpush.msrb.mxu3 %v890_v44  ;;  %v876_v43 = vld [vmem:[%s2057_s9 + $0x308] sm:$0xff] }
 0x2ee   : > { %988 = vmatpush.msrb.mxu1 %v857_v33  ;;  %1048 = vmatpush.msra.mxu0 %v905_v34  ;;  %v891_v33 = vld [vmem:[%s2057_s9 + $0x380] sm:$0xff] }
 0x2ef   : > { %1008 = vmatpush.msrb.mxu2 %v873_v47  ;;  %1028 = vmatpush.msrb.mxu3 %v889_v48  ;;  %v532_v48 = vperm.slane %v1902_v17, 4 }
 0x2f0   : > { %989 = vmatpush.msrb.mxu1 %v856_v37  ;;  %1049 = vmatpush.msra.mxu0 %v904_v38  ;;  %v877_v37 = vld [vmem:[%s2057_s9 + $0x310] sm:$0xff] }
 0x2f1   : > { %1009 = vmatpush.msrb.mxu2 %v872_v51  ;;  %1029 = vmatpush.msrb.mxu3 %v888_v52  ;;  %v535_v52 = vperm.slane %v1902_v17, 7 }
 0x2f2   : > { %990 = vmatpush.msrb.mxu1 %v855_v42  ;;  %1050 = vmatpush.msra.mxu0 %v903_v45  ;;  %v529_v42 = vperm.slane %v1902_v17, 1  ;;  %v530_v45 = vperm.slane %v1902_v17, 2 }
 0x2f3   : > { %1010 = vmatpush.msrb.mxu2 %v871_v55  ;;  %1030 = vmatpush.msrb.mxu3 %v887_v56 }
 0x2f4   : > { %991 = vmatpush.msrb.mxu1 %v854_v46  ;;  %1051 = vmatpush.msra.mxu0 %v902_v49  ;;  %v859_v46 = vld [vmem:[%s2057_s9 + $0x280] sm:$0xff] }
 0x2f5   : > { %1011 = vmatpush.msrb.mxu2 %v870_v59  ;;  %1031 = vmatpush.msrb.mxu3 %v886_v60  ;;  %v875_v49 = vld [vmem:[%s2057_s9 + $0x300] sm:$0xff] }
 0x2f6   : > { %992 = vmatpush.msrb.mxu1 %v853_v50  ;;  %1052 = vmatpush.msra.mxu0 %v901_v53 }
 0x2f7   : > { %1012 = vmatpush.msrb.mxu2 %v869_v63  ;;  %1032 = vmatpush.msrb.mxu3 %v885_v0 }
 0x2f8   : > { %993 = vmatpush.msrb.mxu1 %v852_v54  ;;  %1053 = vmatpush.msra.mxu0 %v900_v57 }
 0x2f9   : > { %1013 = vmatpush.msrb.mxu2 %v868_v3  ;;  %1033 = vmatpush.msrb.mxu3 %v884_v4 }
 0x2fa   : > { %994 = vmatpush.msrb.mxu1 %v851_v58  ;;  %1054 = vmatpush.msra.mxu0 %v899_v61 }
 0x2fb   : > { %1014 = vmatpush.msrb.mxu2 %v867_v7  ;;  %1034 = vmatpush.msrb.mxu3 %v883_v8 }
 0x2fc   : > { %995 = vmatpush.msrb.mxu1 %v850_v62  ;;  %1055 = vmatpush.msra.mxu0 %v898_v1 }
 0x2fd   : > { %1015 = vmatpush.msrb.mxu2 %v866_v11  ;;  %1035 = vmatpush.msrb.mxu3 %v882_v12 }
 0x2fe   : > { %996 = vmatpush.msrb.mxu1 %v849_v2  ;;  %1056 = vmatpush.msra.mxu0 %v897_v5  ;;  %v533_v5 = vperm.slane %v1902_v17, 5 }
 0x2ff   : > { %1016 = vmatpush.msrb.mxu2 %v865_v15  ;;  %1036 = vmatpush.msrb.mxu3 %v881_v16 }
 0x300   : > { %997 = vmatpush.msrb.mxu1 %v848_v6  ;;  %1057 = vmatpush.msra.mxu0 %v896_v9  ;;  %v534_v9 = vperm.slane %v1902_v17, 6 }
 0x301   : > { %1017 = vmatpush.msrb.mxu2 %v864_v20  ;;  %1037 = vmatpush.msrb.mxu3 %v880_v21 }
 0x302   : > { %998 = vmatpush.msrb.mxu1 %v847_v10  ;;  %1058 = vmatpush.msra.mxu0 %v895_v13 }
 0x303   : > { %1018 = vmatpush.msrb.mxu2 %v863_v24  ;;  %1038 = vmatpush.msrb.mxu3 %v879_v26 }
 0x304   : > { %999 = vmatpush.msrb.mxu1 %v846_v14  ;;  %1059 = vmatpush.msra.mxu0 %v894_v18 }
 0x305   : > { %1019 = vmatpush.msrb.mxu2 %v862_v30  ;;  %1039 = vmatpush.msrb.mxu3 %v878_v31 }
 0x306   : > { %1000 = vmatpush.msrb.mxu1 %v845_v19  ;;  %1060 = vmatpush.msra.mxu0 %v893_v22 }
 0x307   : > { %1020 = vmatpush.msrb.mxu2 %v861_v36  ;;  %1040 = vmatpush.msrb.mxu3 %v877_v37 }
 0x308   : > { %1001 = vmatpush.msrb.mxu1 %v844_v23  ;;  %1061 = vmatpush.msra.mxu0 %v892_v27 }
 0x309   : > { %1021 = vmatpush.msrb.mxu2 %v860_v39  ;;  %1041 = vmatpush.msrb.mxu3 %v876_v43 }
 0x30a   : > { %1002 = vmatpush.msrb.mxu1 %v843_v29  ;;  %1062 = vmatpush.msra.mxu0 %v891_v33 }
 0x30b   : > { %1022 = vmatpush.msrb.mxu2 %v859_v46  ;;  %1042 = vmatpush.msrb.mxu3 %v875_v49 }
 0x345   : > { %v564_v32 = vpop.f32.mrf.mxu1 }
 0x346   : > { %v1945_v34 = vadd.f32 %v564_v32, %v528_v25  ;;  %v624_v35 = vpop.f32.mrf.mxu0 }
 0x347   : > { %v1953_v38 = vadd.f32 %v624_v35, %v531_v28 }
 0x348   : > { %v715_v41 = vmul.f32 %v1945_v34, %v1945_v34  ;;  %v707_v29 = vmul.f32 0.5, %v1945_v34 }
 0x349   : > { %v718_v44 = vmul.f32 %v1953_v38, %v1953_v38  ;;  %v710_v37 = vmul.f32 0.5, %v1953_v38 }
 0x34a   : > { %v723_v47 = vmul.f32 %v715_v41, %v1945_v34 }
 0x34b   : > { %v726_v50 = vmul.f32 %v718_v44, %v1953_v38  ;;  %v584_v51 = vpop.f32.mrf.mxu2 }
 0x34c   : > { %v731_v53 = vmul.f32 0.044715, %v723_v47  ;;  %v1977_v54 = vadd.f32 %v584_v51, %v529_v42  ;;  %v604_v55 = vpop.f32.mrf.mxu3 }
 0x34d   : > { %v734_v56 = vmul.f32 0.044715, %v726_v50  ;;  %v1979_v57 = vadd.f32 %v604_v55, %v530_v45  ;;  %v644_v58 = vpop.f32.mrf.mxu1 }
 0x34e   : > { %v739_v59 = vadd.f32 %v731_v53, %v1945_v34  ;;  %v716_v60 = vmul.f32 %v1977_v54, %v1977_v54  ;;  %v1984_v61 = vadd.f32 %v644_v58, %v532_v48  ;;  %v704_v62 = vpop.f32.mrf.mxu0  ;;  %v708_v49 = vmul.f32 0.5, %v1977_v54 }
 0x34f   : > { %v742_v63 = vadd.f32 %v734_v56, %v1953_v38  ;;  %v717_v0 = vmul.f32 %v1979_v57, %v1979_v57  ;;  %v1989_v1 = vadd.f32 %v704_v62, %v535_v52  ;;  %v709_v38 = vmul.f32 0.5, %v1979_v57 }
 0x350   : > { %v747_v2 = vmul.f32 0.7978846, %v739_v59  ;;  %v724_v3 = vmul.f32 %v716_v60, %v1977_v54  ;;  %v719_v4 = vmul.f32 %v1984_v61, %v1984_v61  ;;  %v711_v56 = vmul.f32 0.5, %v1984_v61 }
 0x351   : > { %v750_v6 = vmul.f32 0.7978846, %v742_v63  ;;  %v725_v7 = vmul.f32 %v717_v0, %v1979_v57  ;;  %v722_v8 = vmul.f32 %v1989_v1, %v1989_v1  ;;  %v714_v60 = vmul.f32 0.5, %v1989_v1 }
 0x352   : > { %1224 = vtanh.f32 %v747_v2  ;;  %v732_v10 = vmul.f32 0.044715, %v724_v3  ;;  %v727_v11 = vmul.f32 %v719_v4, %v1984_v61 }
 0x353   : > { %1226 = vtanh.f32 %v750_v6  ;;  %v733_v12 = vmul.f32 0.044715, %v725_v7  ;;  %v730_v13 = vmul.f32 %v722_v8, %v1989_v1  ;;  %v664_v14 = vpop.f32.mrf.mxu2 }
 0x354   : > { %v740_v15 = vadd.f32 %v732_v10, %v1977_v54  ;;  %v735_v16 = vmul.f32 0.044715, %v727_v11  ;;  %v665_v18 = vadd.f32 %v664_v14, %v533_v5  ;;  %v684_v19 = vpop.f32.mrf.mxu3 }
 0x355   : > { %v741_v20 = vadd.f32 %v733_v12, %v1979_v57  ;;  %v738_v21 = vmul.f32 0.044715, %v730_v13  ;;  %v685_v22 = vadd.f32 %v684_v19, %v534_v9 }
 0x356   : > { %v748_v23 = vmul.f32 0.7978846, %v740_v15  ;;  %v743_v17 = vadd.f32 %v735_v16, %v1984_v61  ;;  %v720_v24 = vmul.f32 %v665_v18, %v665_v18  ;;  %v712_v3 = vmul.f32 0.5, %v665_v18 }
 0x357   : > { %v749_v25 = vmul.f32 0.7978846, %v741_v20  ;;  %v746_v26 = vadd.f32 %v738_v21, %v1989_v1  ;;  %v721_v27 = vmul.f32 %v685_v22, %v685_v22  ;;  %v713_v5 = vmul.f32 0.5, %v685_v22 }
 0x358   : > { %v1225_v28 = vpop.eup %1224  ;;  %1228 = vtanh.f32 %v748_v23  ;;  %v751_v30 = vmul.f32 0.7978846, %v743_v17  ;;  %v728_v31 = vmul.f32 %v720_v24, %v665_v18  ;;  %v1213_v23 = vld [vmem:[%s2058_s10] ss:$0 sm:$0xff] }
 0x359   : > { %v1227_v32 = vpop.eup %1226  ;;  %1230 = vtanh.f32 %v749_v25  ;;  %v754_v33 = vmul.f32 0.7978846, %v746_v26  ;;  %v729_v35 = vmul.f32 %v721_v27, %v685_v22  ;;  %v763_v36 = vadd.f32 1.0, %v1225_v28 }
 0x35a   : > { %1232 = vtanh.f32 %v751_v30  ;;  %v736_v39 = vmul.f32 0.044715, %v728_v31  ;;  %v766_v41 = vadd.f32 1.0, %v1227_v32 }
 0x35b   : > { %1234 = vtanh.f32 %v754_v33  ;;  %v737_v42 = vmul.f32 0.044715, %v729_v35  ;;  %v771_v43 = vmul.f32 %v763_v36, %v707_v29 }
 0x35c   : > { %v744_v44 = vadd.f32 %v736_v39, %v665_v18  ;;  %v774_v45 = vmul.f32 %v766_v41, %v710_v37 }
 0x35d   : > { %v745_v46 = vadd.f32 %v737_v42, %v685_v22  ;;  %923 = vmatmul.f32.vlgmr.msra.gmra.mxu1 %v771_v43 }
 0x35e   : > { %v1229_v34 = vpop.eup %1228  ;;  %v752_v47 = vmul.f32 0.7978846, %v744_v44  ;;  %983 = vmatmul.f32.vlgmr.msrb.gmra.mxu0 %v774_v45 }
 0x35f   : > { %v1231_v48 = vpop.eup %1230  ;;  %v753_v50 = vmul.f32 0.7978846, %v745_v46  ;;  %v764_v51 = vadd.f32 1.0, %v1229_v34 }
 0x360   : > { %v1233_v52 = vpop.eup %1232  ;;  %1236 = vtanh.f32 %v752_v47  ;;  %v765_v53 = vadd.f32 1.0, %v1231_v48 }
 0x361   : > { %v1235_v55 = vpop.eup %1234  ;;  %1238 = vtanh.f32 %v753_v50  ;;  %v772_v58 = vmul.f32 %v764_v51, %v708_v49  ;;  %v767_v59 = vadd.f32 1.0, %v1233_v52 }
 0x362   : > { %v773_v62 = vmul.f32 %v765_v53, %v709_v38  ;;  %v770_v63 = vadd.f32 1.0, %v1235_v55 }
 0x363   : > { %943 = vmatmul.f32.vlgmr.msra.gmra.mxu2 %v772_v58  ;;  %v775_v0 = vmul.f32 %v767_v59, %v711_v56 }
 0x364   : > { %963 = vmatmul.f32.vlgmr.msra.gmra.mxu3 %v773_v62  ;;  %v778_v54 = vmul.f32 %v770_v63, %v714_v60 }
 0x365   : > { %1003 = vmatmul.f32.vlgmr.msrb.gmra.mxu1 %v775_v0 }
 0x366   : > { %v1237_v2 = vpop.eup %1236  ;;  %1063 = vmatmul.f32.vlgmr.msra.gmra.mxu0 %v778_v54 }
 0x367   : > { %v1239_v57 = vpop.eup %1238  ;;  %v768_v4 = vadd.f32 1.0, %v1237_v2 }
 0x368   : > { %v769_v61 = vadd.f32 1.0, %v1239_v57 }
 0x369   : > { %v776_v6 = vmul.f32 %v768_v4, %v712_v3 }
 0x36a   : > { %v777_v7 = vmul.f32 %v769_v61, %v713_v5 }
 0x36b   : > { %1023 = vmatmul.f32.vlgmr.msrb.gmra.mxu2 %v776_v6 }
 0x36c   : > { %1043 = vmatmul.f32.vlgmr.msrb.gmra.mxu3 %v777_v7 }
 0x3da   : > { %v924_v1 = vpop.f32.mrf.mxu1 }
 0x3db   : > { %v984_v11 = vpop.f32.mrf.mxu0 }
 0x3e2   : > { %v1004_v14 = vpop.f32.mrf.mxu1 }
 0x3e3   : > { %v1064_v21 = vpop.f32.mrf.mxu0 }
 0x3e6   : > { %v944_v8 = vpop.f32.mrf.mxu2 }
 0x3e7   : > { %v945_v9 = vadd.f32 %v944_v8, %v924_v1  ;;  %v964_v10 = vpop.f32.mrf.mxu3 }
 0x3e9   : > { %v965_v12 = vadd.f32 %v964_v10, %v945_v9 }
 0x3eb   : > { %v985_v13 = vadd.f32 %v984_v11, %v965_v12 }
 0x3ed   : > { %v1005_v15 = vadd.f32 %v1004_v14, %v985_v13 }
 0x3ee   : > { %v1024_v16 = vpop.f32.mrf.mxu2 }
 0x3ef   : > { %v1025_v18 = vadd.f32 %v1024_v16, %v1005_v15  ;;  %v1044_v19 = vpop.f32.mrf.mxu3 }
 0x3f1   : > { %v1045_v20 = vadd.f32 %v1044_v19, %v1025_v18 }
 0x3f3   : > { %v1065_v22 = vadd.f32 %v1064_v21, %v1045_v20 }
 0x3f5   : > { %v1067_v17 = vadd.f32 %v1065_v22, %v1442_v40 }
 0x3f7   : > { %v1072_v24 = vadd.f32 %v1213_v23, %v1067_v17 }
 0x3f9   : > { %1073 = vst.msk [vmem:[%s377_s13] sm:$0xff] %vm385_vm0, %v1072_v24 }
 0x3fa   : > { %1267 = shalt.err (!%p1264_p3)
}
 0x3fb   : > { %1168 = dma.vmem_to_hbm [thread:$0]  (%p1403_p5), %s1088_s14, 128, %s1090_s0, %s1075_s21  }
 0x3fc PF: > { %p1174_p4 = scmp.ge.s32.totalorder %s1302_s20, 2  ;;  %s1101_s15 = sand.u32 1, %s1290_s17  }
 0x3fd   : > { %s1102_s13 = scalar_lea.sflag [#allocation3], %s1101_s15 }
 0x3fe   : > { %p1171_p7 = pnand %p1174_p4, %p1407_p6 }
 0x400   : > { %p1172_p8 = pneg %p1171_p7 }
 0x402   : > { %1285 = dma.done.wait (%p1172_p8), %s1102_s13, 128  }
 0x403   : > { %1287 = vsyncadd (%p1172_p8), %s1102_s13, 4294967168  ;;  %p21_p9 = scmp.ge.s32.totalorder %s1390_s23, 4   ;;  %s2064_s17 = smov %s1294_s18 }
 0x404   : > { %s2065_s18 = smov %s1298_s19  ;;  %s2066_s19 = smov %s1401_s26 }
 0x405   : > { %s2067_s20 = smov %s1390_s23  ;;  %23 = sbr.rel (!%p21_p9) target bundleno = 5 (0x5), region = 99 }
 0x40a   :  { %1108 = vsyncpa [#allocation3], 1 }
 0x40b   :  { %1110 = vsyncpa [#allocation3 + $0x1], 1 }

</bundles_post_ra>
